<compile_context>
chip_gen: v6e
topology: v6e:2x2x1
jax: 0.10.0
libtpu: 0.0.40
codegen_flags: <defaults>
</compile_context>

<pallas_src>
import functools

import jax
import jax.numpy as jnp
import numpy as np
from jax.experimental import pallas as pl
from jax.experimental.pallas import tpu as pltpu


# ----------------------------------------------------------------------------
# Static im2col index plumbing (numpy, computed once at import time).
# ----------------------------------------------------------------------------
def _build_patch_indices():
    """Source-pixel indices for the fused conv1 patch gather.

    Index axes [w1, g, r, ff]:
      w1 = di*2+dj      : conv1 2x2 pool-window position  (4)
      g  = ki           : conv2 tap row  (K-group index)   (4)
      r  = w2*4+p2      : (pool2 window, final position)   (16)
      ff = m*64 + f     : m = kj (group member = conv2 tap col),
                          f = ki1*8+kj1 (conv1 im2col feat) (256)
    Referenced input pixel:
      h = 32*a + 16*du + 8*ki + 4*di + ki1
      w = 32*b + 16*dv + 8*kj + 4*dj + kj1
    """
    w1 = np.arange(4).reshape(4, 1, 1, 1)
    g = np.arange(4).reshape(1, 4, 1, 1)
    r = np.arange(16).reshape(1, 1, 16, 1)
    ff = np.arange(256).reshape(1, 1, 1, 256)
    di, dj = w1 // 2, w1 % 2
    ki = g
    w2, p2 = r // 4, r % 4
    du, dv = w2 // 2, w2 % 2
    a, b = p2 // 2, p2 % 2
    m, f = ff // 64, ff % 64
    kj = m
    ki1, kj1 = f // 8, f % 8
    idx_h = 32 * a + 16 * du + 8 * ki + 4 * di + ki1
    idx_w = 32 * b + 16 * dv + 8 * kj + 4 * dj + kj1
    return idx_h.astype(np.int32), idx_w.astype(np.int32)


_IDX_H, _IDX_W = _build_patch_indices()


# ----------------------------------------------------------------------------
# The fused Pallas kernel (one grid step = one batch tile of `bt` samples).
# ----------------------------------------------------------------------------
def _qnet_fused_kernel(p_ref, w1_ref, b1_ref, w2_ref, b2_ref,
                       wf1_ref, bf1_ref, wf2_ref, bf2_ref, out_ref, *, bt):
    f32 = jnp.float32
    cd = w1_ref.dtype                 # compute/storage dtype of weights (bf16)
    rows_g = 16 * bt                  # rows per conv2-tap group: 4(w2)*4(p2)*bt
    blk = 4 * bt                      # rows per pool2 window block: 4(p2)*bt

    # --- Stage 1: conv1.  4 hoisted lane-dense (64*bt,256)x(256,128) matmuls
    # (one per conv1 pool-window position) with a running max = the 2x2 pool.
    # The (256,128) weight slab is block-diagonal, so the 128 output lanes are
    # fully dense: lane = (conv2 tap col m)*32 + conv1 channel c.
    w1 = w1_ref[...]
    h = jnp.dot(p_ref[0], w1, preferred_element_type=f32)
    for w in range(1, 4):
        h = jnp.maximum(h, jnp.dot(p_ref[w], w1, preferred_element_type=f32))
    # bias is per conv1 channel (tiled over the 4 lane groups) -> add after max.
    z1 = jnp.maximum(h + b1_ref[...], 0.0).astype(cd)   # (64*bt,128) rows (g,w2,p2,b)

    # --- Stage 2: conv2 = 4 fully K-dense (rows_g,128)x(128,128) matmuls,
    # summed over the 4 tap-row groups.
    y2 = jnp.dot(z1[0:rows_g], w2_ref[0], preferred_element_type=f32)
    for g in range(1, 4):
        y2 = y2 + jnp.dot(z1[g * rows_g:(g + 1) * rows_g], w2_ref[g],
                          preferred_element_type=f32)
    y2 = y2 + b2_ref[...]                                # (16*bt,128) rows (w2,p2,b)

    # conv2 2x2 max-pool + ReLU as row-block maxes over the 4 w2 blocks.
    z2 = jnp.maximum(jnp.maximum(y2[0:blk], y2[blk:2 * blk]),
                     jnp.maximum(y2[2 * blk:3 * blk], y2[3 * blk:4 * blk]))
    z2 = jnp.maximum(z2, 0.0).astype(cd)                 # (4*bt,128) rows (p2,b)

    # --- fc1 + ReLU.  The torch NCHW flatten (feature = c*4 + p2) is absorbed
    # into per-p2 weight slabs -> a 4-term matmul sum over contiguous row blocks.
    hf = jnp.dot(z2[0:bt], wf1_ref[0], preferred_element_type=f32)
    for p in range(1, 4):
        hf = hf + jnp.dot(z2[p * bt:(p + 1) * bt], wf1_ref[p],
                          preferred_element_type=f32)
    hf = jnp.maximum(hf + bf1_ref[...], 0.0).astype(cd)  # (bt,128)

    # --- fc2, lane-padded to 128 (wrapper slices back to action_dim).
    # NOTE: for bt < 8 this is a masked sub-8-sublane store (correct; batching
    # past 8 samples per tile avoids the masked-store path).
    out_ref[...] = (jnp.dot(hf, wf2_ref[...], preferred_element_type=f32)
                    + bf2_ref[...]).astype(out_ref.dtype)


# ----------------------------------------------------------------------------
# One-time weight repack (done OUTSIDE the jitted forward): transpose into
# kernel layout, zero-pad output dims to 128 lanes, cast weights to bf16.
# ----------------------------------------------------------------------------
def prepare_params(params, action_dim, *, compute_dtype=jnp.bfloat16):
    W1, b1, W2, b2, Wf1, bf1, Wf2, bf2 = params
    hidden = Wf1.shape[0]
    assert Wf1.shape[1] == 256 and hidden <= 128 and action_dim <= 128
    f32 = jnp.float32

    # conv1: (32,1,8,8) -> block-diagonal (256,128):
    #   [m*64 + (ki1*8+kj1), m*32 + c] = W1[c, 0, ki1, kj1], m = conv2 tap col.
    w1_mat = W1.reshape(32, 64).T                       # (f, c)
    W1p = jnp.zeros((256, 128), f32)
    for m in range(4):
        W1p = W1p.at[m * 64:(m + 1) * 64, m * 32:(m + 1) * 32].set(w1_mat)
    b1p = jnp.tile(b1, 4).reshape(1, 128).astype(f32)   # bias tiled per lane group

    # conv2: (64,32,4,4) -> 4 K-dense group slabs (4,128,128):
    #   [g=ki, m*32+c, o] = W2[o, c, ki, kj=m]; output lanes 64..127 zero.
    w2_perm = jnp.transpose(W2, (2, 3, 1, 0)).reshape(4, 128, 64)
    W2g = jnp.zeros((4, 128, 128), f32).at[:, :, :64].set(w2_perm)
    b2p = jnp.zeros((1, 128), f32).at[0, :64].set(b2)

    # fc1: (hidden, 256) -> 4 per-p2 slabs (4,128,128): [p2, c, n] = Wf1[n, c*4+p2].
    Wf1t = jnp.zeros((4, 128, 128), f32).at[:, :64, :hidden].set(
        jnp.transpose(Wf1.reshape(hidden, 64, 4), (2, 1, 0)))
    bf1p = jnp.zeros((1, 128), f32).at[0, :hidden].set(bf1)

    # fc2: (A, hidden) -> (128,128), output lanes padded to 128.
    Wf2p = jnp.zeros((128, 128), f32).at[:hidden, :action_dim].set(Wf2.T)
    bf2p = jnp.zeros((1, 128), f32).at[0, :action_dim].set(bf2)

    cd = compute_dtype
    return (W1p.astype(cd), b1p, W2g.astype(cd), b2p,
            Wf1t.astype(cd), bf1p, Wf2p.astype(cd), bf2p)


# ----------------------------------------------------------------------------
# Fused forward (one pallas_call, batch grid) and pure-JAX reference.
# ----------------------------------------------------------------------------
def qnet_forward(x, prepared, *, action_dim, batch_tile=4):
    W1p, b1p, W2g, b2p, Wf1t, bf1p, Wf2p, bf2p = prepared
    B = x.shape[0]
    assert x.shape[1:] == (84, 84)
    cd = W1p.dtype

    # Batch tile: default 4 keeps the conv1 accumulator ((64*bt,128) f32) at
    # ~32 vregs.  Larger training tiles should accumulate into a pltpu.VMEM
    # scratch and/or raise vmem_limit_bytes (v5e default scoped VMEM is 16 MiB,
    # v7x has only 64 MiB physical).
    bt = max(1, min(batch_tile, B))
    B_pad = -(-B // bt) * bt
    if B_pad != B:
        x = jnp.pad(x, ((0, B_pad - B), (0, 0), (0, 0)))
    n_tiles = B_pad // bt

    # conv1 im2col patches, pre-replicated per (conv2 tap, pool2 window) and
    # emitted directly in bf16 so the XLA-side replicated intermediate is half
    # the bytes.  Pure layout plumbing: one constant-index gather + one transpose.
    # TODO(synk): gather only the 400 unique conv1 patches and do the tap/pool
    #             replication with strided row slices inside the kernel to cut
    #             input-path HBM traffic a further ~2.6x.
    p = x.astype(cd)[:, _IDX_H, _IDX_W]                 # (B_pad, 4, 4, 16, 256)
    p = p.reshape(n_tiles, bt, 4, 4, 16, 256)
    p = jnp.transpose(p, (2, 0, 3, 4, 1, 5))            # (w1, tile, g, r, b, f)
    p1d = p.reshape(4, n_tiles, 64 * bt, 256)

    def _resident(a):  # full-array block, constant index_map -> VMEM-resident
        nd = a.ndim
        return pl.BlockSpec(a.shape, lambda i, _nd=nd: (0,) * _nd)

    patch_spec = pl.BlockSpec((4, None, 64 * bt, 256), lambda i: (0, i, 0, 0))
    # If the patch DMA ever binds on v6e, deepen its pipeline with
    # pipeline_mode=pl.Buffered(3) on patch_spec (negligible VMEM cost).

    out_pad = pl.pallas_call(
        functools.partial(_qnet_fused_kernel, bt=bt),
        out_shape=jax.ShapeDtypeStruct((n_tiles, bt, 128), jnp.float32),
        grid=(n_tiles,),
        in_specs=[patch_spec,
                  _resident(W1p), _resident(b1p),
                  _resident(W2g), _resident(b2p),
                  _resident(Wf1t), _resident(bf1p),
                  _resident(Wf2p), _resident(bf2p)],
        out_specs=pl.BlockSpec((None, bt, 128), lambda i: (i, 0, 0)),
        compiler_params=pltpu.CompilerParams(
            dimension_semantics=("parallel",)),   # megacore / v7x dual-TC
    )(p1d, W1p, b1p, W2g, b2p, Wf1t, bf1p, Wf2p, bf2p)

    return out_pad.reshape(B_pad, 128)[:B, :action_dim]


def qnet_reference(x, params):
    W1, b1, W2, b2, Wf1, bf1, Wf2, bf2 = params
    dn = ("NCHW", "OIHW", "NCHW")
    x4 = x[:, None, :, :]
    c1 = jax.lax.conv_general_dilated(x4, W1, (4, 4), "VALID",
                                      dimension_numbers=dn) + b1[None, :, None, None]
    p1 = jax.lax.reduce_window(c1, -jnp.inf, jax.lax.max,
                               (1, 1, 2, 2), (1, 1, 2, 2), "VALID")
    r1 = jnp.maximum(p1, 0.0)
    c2 = jax.lax.conv_general_dilated(r1, W2, (2, 2), "VALID",
                                      dimension_numbers=dn) + b2[None, :, None, None]
    p2 = jax.lax.reduce_window(c2, -jnp.inf, jax.lax.max,
                               (1, 1, 2, 2), (1, 1, 2, 2), "VALID")
    r2 = jnp.maximum(p2, 0.0)
    flat = r2.reshape(x.shape[0], 256)
    h = jnp.maximum(flat @ Wf1.T + bf1, 0.0)
    return h @ Wf2.T + bf2


# ----------------------------------------------------------------------------
# Main
# ----------------------------------------------------------------------------
if __name__ == "__main__":
    BATCH = 2
    HIDDEN_DIM = 128
    ACTION_DIM = 18  # Montezuma's Revenge full action space

    key = jax.random.PRNGKey(0)
    ks = jax.random.split(key, 9)

    # Deterministic synthetic parameters (shapes follow the torch module __init__).
    W1 = 0.05 * jax.random.normal(ks[0], (32, 1, 8, 8), jnp.float32)      # Conv2d(1,32,8)
    b1 = 0.01 * jax.random.normal(ks[1], (32,), jnp.float32)
    W2 = 0.05 * jax.random.normal(ks[2], (64, 32, 4, 4), jnp.float32)     # Conv2d(32,64,4)
    b2 = 0.01 * jax.random.normal(ks[3], (64,), jnp.float32)
    Wf1 = 0.05 * jax.random.normal(ks[4], (HIDDEN_DIM, 256), jnp.float32)  # Linear(256,128)
    bf1 = 0.01 * jax.random.normal(ks[5], (HIDDEN_DIM,), jnp.float32)
    Wf2 = 0.05 * jax.random.normal(ks[6], (ACTION_DIM, HIDDEN_DIM), jnp.float32)  # Linear(128,A)
    bf2 = 0.01 * jax.random.normal(ks[7], (ACTION_DIM,), jnp.float32)
    params = (W1, b1, W2, b2, Wf1, bf1, Wf2, bf2)

    # Input must be (B, 84, 84) for the flatten -> Linear(256, .) to be consistent.
    x = jax.random.normal(ks[8], (BATCH, 84, 84), jnp.float32)

    prepared = prepare_params(params, ACTION_DIM)
    fwd = jax.jit(functools.partial(qnet_forward, action_dim=ACTION_DIM))
    out = jax.block_until_ready(fwd(x, prepared))
    assert out.shape == (BATCH, ACTION_DIM), out.shape

    ref = jax.block_until_ready(qnet_reference(x, params))
    max_err = float(jnp.max(jnp.abs(out - ref)))
    # bf16-stored weights/activations with f32 accumulation vs an f32 XLA
    # reference (itself bf16-pass MXU at default precision): ~1e-3 scale error
    # expected; 2e-2 tolerance still catches layout/ordering bugs.  If exact
    # argmax ties ever matter for the DQN policy, keep fc2 weights in f32 and
    # request precision=HIGHEST on that dot.
    assert jnp.allclose(out, ref, rtol=2e-2, atol=2e-2), f"mismatch: {max_err}"
    print("KERNEL_OK")
</pallas_src>

<mosaic_0001>
module attributes {stable_mosaic.version = 11 : i64} {
  func.func @_qnet_fused_kernel(%arg0: i32, %arg1: memref<4x1x128x256xbf16, #tpu.memory_space<vmem>>, %arg2: memref<256x128xbf16, #tpu.memory_space<vmem>>, %arg3: memref<1x128xf32, #tpu.memory_space<vmem>>, %arg4: memref<4x128x128xbf16, #tpu.memory_space<vmem>>, %arg5: memref<1x128xf32, #tpu.memory_space<vmem>>, %arg6: memref<4x128x128xbf16, #tpu.memory_space<vmem>>, %arg7: memref<1x128xf32, #tpu.memory_space<vmem>>, %arg8: memref<128x128xbf16, #tpu.memory_space<vmem>>, %arg9: memref<1x128xf32, #tpu.memory_space<vmem>>, %arg10: memref<1x2x128xf32, #tpu.memory_space<vmem>>) attributes {dimension_semantics = [#tpu.dimension_semantics<parallel>], iteration_bounds = array<i64: 1>, scalar_prefetch = 0 : i64, scratch_operands = 0 : i64, tpu.core_type = #tpu.core_type<tc>, window_params = [{transform_indices = @transform_0, window_bounds = array<i64: 4, 1, 128, 256>}, {pipeline_mode = #tpu.pipeline_mode<synchronous>, transform_indices = @transform_1, window_bounds = array<i64: 256, 128>}, {pipeline_mode = #tpu.pipeline_mode<synchronous>, transform_indices = @transform_2, window_bounds = array<i64: 1, 128>}, {pipeline_mode = #tpu.pipeline_mode<synchronous>, transform_indices = @transform_3, window_bounds = array<i64: 4, 128, 128>}, {pipeline_mode = #tpu.pipeline_mode<synchronous>, transform_indices = @transform_4, window_bounds = array<i64: 1, 128>}, {pipeline_mode = #tpu.pipeline_mode<synchronous>, transform_indices = @transform_5, window_bounds = array<i64: 4, 128, 128>}, {pipeline_mode = #tpu.pipeline_mode<synchronous>, transform_indices = @transform_6, window_bounds = array<i64: 1, 128>}, {pipeline_mode = #tpu.pipeline_mode<synchronous>, transform_indices = @transform_7, window_bounds = array<i64: 128, 128>}, {pipeline_mode = #tpu.pipeline_mode<synchronous>, transform_indices = @transform_8, window_bounds = array<i64: 1, 128>}, {transform_indices = @transform_9, window_bounds = array<i64: 1, 2, 128>}]} {
    %c0 = arith.constant 0 : index
    %c0_0 = arith.constant 0 : index
    %0 = vector.load %arg2[%c0, %c0_0] : memref<256x128xbf16, #tpu.memory_space<vmem>>, vector<256x128xbf16>
    %c0_1 = arith.constant 0 : index
    %c0_2 = arith.constant 0 : index
    %c0_3 = arith.constant 0 : index
    %c0_4 = arith.constant 0 : index
    %1 = vector.load %arg1[%c0_1, %c0_2, %c0_3, %c0_4] : memref<4x1x128x256xbf16, #tpu.memory_space<vmem>>, vector<1x1x128x256xbf16>
    %2 = vector.shape_cast %1 : vector<1x1x128x256xbf16> to vector<128x256xbf16>
    %cst = arith.constant dense<0.000000e+00> : vector<128x128xf32>
    %3 = tpu.matmul %2, %0, %cst {dimension_numbers = #tpu.dot_dimension_numbers<[1], [0], [0], [1], [0, 0, 1, 1], [], []>} : vector<128x256xbf16>, vector<256x128xbf16>, vector<128x128xf32> -> vector<128x128xf32>
    %c1 = arith.constant 1 : index
    %c0_5 = arith.constant 0 : index
    %c0_6 = arith.constant 0 : index
    %c0_7 = arith.constant 0 : index
    %4 = vector.load %arg1[%c1, %c0_5, %c0_6, %c0_7] : memref<4x1x128x256xbf16, #tpu.memory_space<vmem>>, vector<1x1x128x256xbf16>
    %5 = vector.shape_cast %4 : vector<1x1x128x256xbf16> to vector<128x256xbf16>
    %cst_8 = arith.constant dense<0.000000e+00> : vector<128x128xf32>
    %6 = tpu.matmul %5, %0, %cst_8 {dimension_numbers = #tpu.dot_dimension_numbers<[1], [0], [0], [1], [0, 0, 1, 1], [], []>} : vector<128x256xbf16>, vector<256x128xbf16>, vector<128x128xf32> -> vector<128x128xf32>
    %7 = arith.maximumf %3, %6 : vector<128x128xf32>
    %c2 = arith.constant 2 : index
    %c0_9 = arith.constant 0 : index
    %c0_10 = arith.constant 0 : index
    %c0_11 = arith.constant 0 : index
    %8 = vector.load %arg1[%c2, %c0_9, %c0_10, %c0_11] : memref<4x1x128x256xbf16, #tpu.memory_space<vmem>>, vector<1x1x128x256xbf16>
    %9 = vector.shape_cast %8 : vector<1x1x128x256xbf16> to vector<128x256xbf16>
    %cst_12 = arith.constant dense<0.000000e+00> : vector<128x128xf32>
    %10 = tpu.matmul %9, %0, %cst_12 {dimension_numbers = #tpu.dot_dimension_numbers<[1], [0], [0], [1], [0, 0, 1, 1], [], []>} : vector<128x256xbf16>, vector<256x128xbf16>, vector<128x128xf32> -> vector<128x128xf32>
    %11 = arith.maximumf %7, %10 : vector<128x128xf32>
    %c3 = arith.constant 3 : index
    %c0_13 = arith.constant 0 : index
    %c0_14 = arith.constant 0 : index
    %c0_15 = arith.constant 0 : index
    %12 = vector.load %arg1[%c3, %c0_13, %c0_14, %c0_15] : memref<4x1x128x256xbf16, #tpu.memory_space<vmem>>, vector<1x1x128x256xbf16>
    %13 = vector.shape_cast %12 : vector<1x1x128x256xbf16> to vector<128x256xbf16>
    %cst_16 = arith.constant dense<0.000000e+00> : vector<128x128xf32>
    %14 = tpu.matmul %13, %0, %cst_16 {dimension_numbers = #tpu.dot_dimension_numbers<[1], [0], [0], [1], [0, 0, 1, 1], [], []>} : vector<128x256xbf16>, vector<256x128xbf16>, vector<128x128xf32> -> vector<128x128xf32>
    %15 = arith.maximumf %11, %14 : vector<128x128xf32>
    %c0_17 = arith.constant 0 : index
    %c0_18 = arith.constant 0 : index
    %16 = vector.load %arg3[%c0_17, %c0_18] : memref<1x128xf32, #tpu.memory_space<vmem>>, vector<1x128xf32>
    %17 = vector.broadcast %16 : vector<1x128xf32> to vector<128x128xf32>
    %18 = arith.addf %15, %17 : vector<128x128xf32>
    %cst_19 = arith.constant 0.000000e+00 : f32
    %19 = vector.broadcast %cst_19 : f32 to vector<128x128xf32>
    %20 = arith.maximumf %18, %19 : vector<128x128xf32>
    %21 = arith.truncf %20 : vector<128x128xf32> to vector<128x128xbf16>
    %22 = vector.extract_strided_slice %21 {offsets = [0, 0], sizes = [32, 128], strides = [1, 1]} : vector<128x128xbf16> to vector<32x128xbf16>
    %c0_20 = arith.constant 0 : index
    %c0_21 = arith.constant 0 : index
    %c0_22 = arith.constant 0 : index
    %23 = vector.load %arg4[%c0_20, %c0_21, %c0_22] : memref<4x128x128xbf16, #tpu.memory_space<vmem>>, vector<1x128x128xbf16>
    %24 = vector.shape_cast %23 : vector<1x128x128xbf16> to vector<128x128xbf16>
    %cst_23 = arith.constant dense<0.000000e+00> : vector<32x128xf32>
    %25 = tpu.matmul %22, %24, %cst_23 {dimension_numbers = #tpu.dot_dimension_numbers<[1], [0], [0], [1], [0, 0, 1, 1], [], []>} : vector<32x128xbf16>, vector<128x128xbf16>, vector<32x128xf32> -> vector<32x128xf32>
    %26 = vector.extract_strided_slice %21 {offsets = [32, 0], sizes = [32, 128], strides = [1, 1]} : vector<128x128xbf16> to vector<32x128xbf16>
    %c1_24 = arith.constant 1 : index
    %c0_25 = arith.constant 0 : index
    %c0_26 = arith.constant 0 : index
    %27 = vector.load %arg4[%c1_24, %c0_25, %c0_26] : memref<4x128x128xbf16, #tpu.memory_space<vmem>>, vector<1x128x128xbf16>
    %28 = vector.shape_cast %27 : vector<1x128x128xbf16> to vector<128x128xbf16>
    %cst_27 = arith.constant dense<0.000000e+00> : vector<32x128xf32>
    %29 = tpu.matmul %26, %28, %cst_27 {dimension_numbers = #tpu.dot_dimension_numbers<[1], [0], [0], [1], [0, 0, 1, 1], [], []>} : vector<32x128xbf16>, vector<128x128xbf16>, vector<32x128xf32> -> vector<32x128xf32>
    %30 = arith.addf %25, %29 : vector<32x128xf32>
    %31 = vector.extract_strided_slice %21 {offsets = [64, 0], sizes = [32, 128], strides = [1, 1]} : vector<128x128xbf16> to vector<32x128xbf16>
    %c2_28 = arith.constant 2 : index
    %c0_29 = arith.constant 0 : index
    %c0_30 = arith.constant 0 : index
    %32 = vector.load %arg4[%c2_28, %c0_29, %c0_30] : memref<4x128x128xbf16, #tpu.memory_space<vmem>>, vector<1x128x128xbf16>
    %33 = vector.shape_cast %32 : vector<1x128x128xbf16> to vector<128x128xbf16>
    %cst_31 = arith.constant dense<0.000000e+00> : vector<32x128xf32>
    %34 = tpu.matmul %31, %33, %cst_31 {dimension_numbers = #tpu.dot_dimension_numbers<[1], [0], [0], [1], [0, 0, 1, 1], [], []>} : vector<32x128xbf16>, vector<128x128xbf16>, vector<32x128xf32> -> vector<32x128xf32>
    %35 = arith.addf %30, %34 : vector<32x128xf32>
    %36 = vector.extract_strided_slice %21 {offsets = [96, 0], sizes = [32, 128], strides = [1, 1]} : vector<128x128xbf16> to vector<32x128xbf16>
    %c3_32 = arith.constant 3 : index
    %c0_33 = arith.constant 0 : index
    %c0_34 = arith.constant 0 : index
    %37 = vector.load %arg4[%c3_32, %c0_33, %c0_34] : memref<4x128x128xbf16, #tpu.memory_space<vmem>>, vector<1x128x128xbf16>
    %38 = vector.shape_cast %37 : vector<1x128x128xbf16> to vector<128x128xbf16>
    %cst_35 = arith.constant dense<0.000000e+00> : vector<32x128xf32>
    %39 = tpu.matmul %36, %38, %cst_35 {dimension_numbers = #tpu.dot_dimension_numbers<[1], [0], [0], [1], [0, 0, 1, 1], [], []>} : vector<32x128xbf16>, vector<128x128xbf16>, vector<32x128xf32> -> vector<32x128xf32>
    %40 = arith.addf %35, %39 : vector<32x128xf32>
    %c0_36 = arith.constant 0 : index
    %c0_37 = arith.constant 0 : index
    %41 = vector.load %arg5[%c0_36, %c0_37] : memref<1x128xf32, #tpu.memory_space<vmem>>, vector<1x128xf32>
    %42 = vector.broadcast %41 : vector<1x128xf32> to vector<32x128xf32>
    %43 = arith.addf %40, %42 : vector<32x128xf32>
    %44 = vector.extract_strided_slice %43 {offsets = [0, 0], sizes = [8, 128], strides = [1, 1]} : vector<32x128xf32> to vector<8x128xf32>
    %45 = vector.extract_strided_slice %43 {offsets = [8, 0], sizes = [8, 128], strides = [1, 1]} : vector<32x128xf32> to vector<8x128xf32>
    %46 = arith.maximumf %44, %45 : vector<8x128xf32>
    %47 = vector.extract_strided_slice %43 {offsets = [16, 0], sizes = [8, 128], strides = [1, 1]} : vector<32x128xf32> to vector<8x128xf32>
    %48 = vector.extract_strided_slice %43 {offsets = [24, 0], sizes = [8, 128], strides = [1, 1]} : vector<32x128xf32> to vector<8x128xf32>
    %49 = arith.maximumf %47, %48 : vector<8x128xf32>
    %50 = arith.maximumf %46, %49 : vector<8x128xf32>
    %cst_38 = arith.constant 0.000000e+00 : f32
    %51 = vector.broadcast %cst_38 : f32 to vector<8x128xf32>
    %52 = arith.maximumf %50, %51 : vector<8x128xf32>
    %53 = arith.truncf %52 : vector<8x128xf32> to vector<8x128xbf16>
    %54 = vector.extract_strided_slice %53 {offsets = [0, 0], sizes = [2, 128], strides = [1, 1]} : vector<8x128xbf16> to vector<2x128xbf16>
    %c0_39 = arith.constant 0 : index
    %c0_40 = arith.constant 0 : index
    %c0_41 = arith.constant 0 : index
    %55 = vector.load %arg6[%c0_39, %c0_40, %c0_41] : memref<4x128x128xbf16, #tpu.memory_space<vmem>>, vector<1x128x128xbf16>
    %56 = vector.shape_cast %55 : vector<1x128x128xbf16> to vector<128x128xbf16>
    %cst_42 = arith.constant dense<0.000000e+00> : vector<2x128xf32>
    %57 = tpu.matmul %54, %56, %cst_42 {dimension_numbers = #tpu.dot_dimension_numbers<[1], [0], [0], [1], [0, 0, 1, 1], [], []>} : vector<2x128xbf16>, vector<128x128xbf16>, vector<2x128xf32> -> vector<2x128xf32>
    %58 = vector.extract_strided_slice %53 {offsets = [2, 0], sizes = [2, 128], strides = [1, 1]} : vector<8x128xbf16> to vector<2x128xbf16>
    %c1_43 = arith.constant 1 : index
    %c0_44 = arith.constant 0 : index
    %c0_45 = arith.constant 0 : index
    %59 = vector.load %arg6[%c1_43, %c0_44, %c0_45] : memref<4x128x128xbf16, #tpu.memory_space<vmem>>, vector<1x128x128xbf16>
    %60 = vector.shape_cast %59 : vector<1x128x128xbf16> to vector<128x128xbf16>
    %cst_46 = arith.constant dense<0.000000e+00> : vector<2x128xf32>
    %61 = tpu.matmul %58, %60, %cst_46 {dimension_numbers = #tpu.dot_dimension_numbers<[1], [0], [0], [1], [0, 0, 1, 1], [], []>} : vector<2x128xbf16>, vector<128x128xbf16>, vector<2x128xf32> -> vector<2x128xf32>
    %62 = arith.addf %57, %61 : vector<2x128xf32>
    %63 = vector.extract_strided_slice %53 {offsets = [4, 0], sizes = [2, 128], strides = [1, 1]} : vector<8x128xbf16> to vector<2x128xbf16>
    %c2_47 = arith.constant 2 : index
    %c0_48 = arith.constant 0 : index
    %c0_49 = arith.constant 0 : index
    %64 = vector.load %arg6[%c2_47, %c0_48, %c0_49] : memref<4x128x128xbf16, #tpu.memory_space<vmem>>, vector<1x128x128xbf16>
    %65 = vector.shape_cast %64 : vector<1x128x128xbf16> to vector<128x128xbf16>
    %cst_50 = arith.constant dense<0.000000e+00> : vector<2x128xf32>
    %66 = tpu.matmul %63, %65, %cst_50 {dimension_numbers = #tpu.dot_dimension_numbers<[1], [0], [0], [1], [0, 0, 1, 1], [], []>} : vector<2x128xbf16>, vector<128x128xbf16>, vector<2x128xf32> -> vector<2x128xf32>
    %67 = arith.addf %62, %66 : vector<2x128xf32>
    %68 = vector.extract_strided_slice %53 {offsets = [6, 0], sizes = [2, 128], strides = [1, 1]} : vector<8x128xbf16> to vector<2x128xbf16>
    %c3_51 = arith.constant 3 : index
    %c0_52 = arith.constant 0 : index
    %c0_53 = arith.constant 0 : index
    %69 = vector.load %arg6[%c3_51, %c0_52, %c0_53] : memref<4x128x128xbf16, #tpu.memory_space<vmem>>, vector<1x128x128xbf16>
    %70 = vector.shape_cast %69 : vector<1x128x128xbf16> to vector<128x128xbf16>
    %cst_54 = arith.constant dense<0.000000e+00> : vector<2x128xf32>
    %71 = tpu.matmul %68, %70, %cst_54 {dimension_numbers = #tpu.dot_dimension_numbers<[1], [0], [0], [1], [0, 0, 1, 1], [], []>} : vector<2x128xbf16>, vector<128x128xbf16>, vector<2x128xf32> -> vector<2x128xf32>
    %72 = arith.addf %67, %71 : vector<2x128xf32>
    %c0_55 = arith.constant 0 : index
    %c0_56 = arith.constant 0 : index
    %73 = vector.load %arg7[%c0_55, %c0_56] : memref<1x128xf32, #tpu.memory_space<vmem>>, vector<1x128xf32>
    %74 = vector.broadcast %73 : vector<1x128xf32> to vector<2x128xf32>
    %75 = arith.addf %72, %74 : vector<2x128xf32>
    %cst_57 = arith.constant 0.000000e+00 : f32
    %76 = vector.broadcast %cst_57 : f32 to vector<2x128xf32>
    %77 = arith.maximumf %75, %76 : vector<2x128xf32>
    %78 = arith.truncf %77 : vector<2x128xf32> to vector<2x128xbf16>
    %c0_58 = arith.constant 0 : index
    %c0_59 = arith.constant 0 : index
    %79 = vector.load %arg8[%c0_58, %c0_59] : memref<128x128xbf16, #tpu.memory_space<vmem>>, vector<128x128xbf16>
    %cst_60 = arith.constant dense<0.000000e+00> : vector<2x128xf32>
    %80 = tpu.matmul %78, %79, %cst_60 {dimension_numbers = #tpu.dot_dimension_numbers<[1], [0], [0], [1], [0, 0, 1, 1], [], []>} : vector<2x128xbf16>, vector<128x128xbf16>, vector<2x128xf32> -> vector<2x128xf32>
    %c0_61 = arith.constant 0 : index
    %c0_62 = arith.constant 0 : index
    %81 = vector.load %arg9[%c0_61, %c0_62] : memref<1x128xf32, #tpu.memory_space<vmem>>, vector<1x128xf32>
    %82 = vector.broadcast %81 : vector<1x128xf32> to vector<2x128xf32>
    %83 = arith.addf %80, %82 : vector<2x128xf32>
    %c0_63 = arith.constant 0 : index
    %c0_64 = arith.constant 0 : index
    %c0_65 = arith.constant 0 : index
    %84 = vector.load %arg10[%c0_63, %c0_64, %c0_65] : memref<1x2x128xf32, #tpu.memory_space<vmem>>, vector<1x2x128xf32>
    %85 = vector.shape_cast %84 : vector<1x2x128xf32> to vector<2x128xf32>
    %86 = vector.shape_cast %83 : vector<2x128xf32> to vector<1x2x128xf32>
    tpu.vector_store %arg10[%c0_63, %c0_64, %c0_65], %86 {strides = array<i32>} : memref<1x2x128xf32, #tpu.memory_space<vmem>>, vector<1x2x128xf32>,
    return
  }
  func.func @transform_0(%arg0: i32) -> (i32, i32, i32, i32) {
    %c0_i32 = arith.constant 0 : i32
    %c0_i32_0 = arith.constant 0 : i32
    %c0_i32_1 = arith.constant 0 : i32
    %c0_i32_2 = arith.constant 0 : i32
    return %c0_i32, %arg0, %c0_i32_0, %c0_i32_1 : i32, i32, i32, i32
  }
  func.func @transform_1(%arg0: i32) -> (i32, i32) {
    %c0_i32 = arith.constant 0 : i32
    %c0_i32_0 = arith.constant 0 : i32
    %c0_i32_1 = arith.constant 0 : i32
    return %c0_i32, %c0_i32_0 : i32, i32
  }
  func.func @transform_2(%arg0: i32) -> (i32, i32) {
    %c0_i32 = arith.constant 0 : i32
    %c0_i32_0 = arith.constant 0 : i32
    %c0_i32_1 = arith.constant 0 : i32
    return %c0_i32, %c0_i32_0 : i32, i32
  }
  func.func @transform_3(%arg0: i32) -> (i32, i32, i32) {
    %c0_i32 = arith.constant 0 : i32
    %c0_i32_0 = arith.constant 0 : i32
    %c0_i32_1 = arith.constant 0 : i32
    %c0_i32_2 = arith.constant 0 : i32
    return %c0_i32, %c0_i32_0, %c0_i32_1 : i32, i32, i32
  }
  func.func @transform_4(%arg0: i32) -> (i32, i32) {
    %c0_i32 = arith.constant 0 : i32
    %c0_i32_0 = arith.constant 0 : i32
    %c0_i32_1 = arith.constant 0 : i32
    return %c0_i32, %c0_i32_0 : i32, i32
  }
  func.func @transform_5(%arg0: i32) -> (i32, i32, i32) {
    %c0_i32 = arith.constant 0 : i32
    %c0_i32_0 = arith.constant 0 : i32
    %c0_i32_1 = arith.constant 0 : i32
    %c0_i32_2 = arith.constant 0 : i32
    return %c0_i32, %c0_i32_0, %c0_i32_1 : i32, i32, i32
  }
  func.func @transform_6(%arg0: i32) -> (i32, i32) {
    %c0_i32 = arith.constant 0 : i32
    %c0_i32_0 = arith.constant 0 : i32
    %c0_i32_1 = arith.constant 0 : i32
    return %c0_i32, %c0_i32_0 : i32, i32
  }
  func.func @transform_7(%arg0: i32) -> (i32, i32) {
    %c0_i32 = arith.constant 0 : i32
    %c0_i32_0 = arith.constant 0 : i32
    %c0_i32_1 = arith.constant 0 : i32
    return %c0_i32, %c0_i32_0 : i32, i32
  }
  func.func @transform_8(%arg0: i32) -> (i32, i32) {
    %c0_i32 = arith.constant 0 : i32
    %c0_i32_0 = arith.constant 0 : i32
    %c0_i32_1 = arith.constant 0 : i32
    return %c0_i32, %c0_i32_0 : i32, i32
  }
  func.func @transform_9(%arg0: i32) -> (i32, i32, i32) {
    %c0_i32 = arith.constant 0 : i32
    %c0_i32_0 = arith.constant 0 : i32
    %c0_i32_1 = arith.constant 0 : i32
    return %arg0, %c0_i32, %c0_i32_0 : i32, i32, i32
  }
}

</mosaic_0001>

<bundles_post_ra>
// kernel: qnet_forward.1
= control target key start
LH: loop header
LB: loop body
LE: loop exit
PB: predicated region body
PF: predicated region fallthrough
CT: control target
= control target key end

     0   :  { %s3936_s0 = inlined_call_operand.vmem [shape: bf16[4,1,128,256], index: 0, kind: input, shape index: {}]   ;;  %s3937_s1 = inlined_call_operand.vmem [shape: bf16[256,128], index: 1, kind: input, shape index: {}]   ;;  %s3938_s2 = inlined_call_operand.vmem [shape: f32[1,128], index: 2, kind: input, shape index: {}]   ;;  %s3939_s3 = inlined_call_operand.vmem [shape: bf16[4,128,128], index: 3, kind: input, shape index: {}]   ;;  %s3940_s4 = inlined_call_operand.vmem [shape: f32[1,128], index: 4, kind: input, shape index: {}]   ;;  %s3941_s5 = inlined_call_operand.vmem [shape: bf16[4,128,128], index: 5, kind: input, shape index: {}]   ;;  %s3942_s6 = inlined_call_operand.vmem [shape: f32[1,128], index: 6, kind: input, shape index: {}]   ;;  %s3943_s7 = inlined_call_operand.vmem [shape: bf16[128,128], index: 7, kind: input, shape index: {}]   ;;  %s3944_s8 = inlined_call_operand.vmem [shape: f32[1,128], index: 8, kind: input, shape index: {}]   ;;  %s3945_s9 = inlined_call_operand.hbm [shape: f32[1,2,128], index: 9, kind: output, shape index: {}]  }
   0x1   :  { %v2899_v0 = vld [vmem:[%s3937_s1 + $0x78] sm:$0xff]   ;;  %v2901_v2 = vld [vmem:[%s3937_s1 + $0x70] sm:$0xff]   ;;  %v2903_v4 = vld [vmem:[%s3937_s1 + $0x68] sm:$0xff]  }
   0x2   :  { %v2900_v1 = vld [vmem:[%s3937_s1 + $0x38] sm:$0xff]   ;;  %2375 = vmatprep.subr.bf16.mxu0 %v2899_v0  ;;  %2439 = vmatprep.subr.bf16.mxu1 %v2899_v0  ;;  %v2902_v3 = vld [vmem:[%s3937_s1 + $0x30] sm:$0xff]   ;;  %v3176_v5 = vld [vmem:[%s3937_s1 + $0x28] sm:$0xff]  }
   0x3   :  { %2376 = vmatpush3.bf16.msra.mxu0 %v2900_v1  ;;  %2440 = vmatpush3.bf16.msra.mxu1 %v2900_v1  ;;  %v3181_v6 = vld [vmem:[%s3937_s1 + $0x60] sm:$0xff]   ;;  %v3195_v8 = vld [vmem:[%s3937_s1 + $0x58] sm:$0xff]   ;;  %v3209_v10 = vld [vmem:[%s3937_s1 + $0x50] sm:$0xff]  }
   0x4   :  { %2377 = vmatprep.subr.bf16.mxu0 %v2901_v2  ;;  %2441 = vmatprep.subr.bf16.mxu1 %v2901_v2  ;;  %v3188_v7 = vld [vmem:[%s3937_s1 + $0x20] sm:$0xff]   ;;  %v3202_v9 = vld [vmem:[%s3937_s1 + $0x18] sm:$0xff]   ;;  %v3222_v13 = vld [vmem:[%s3937_s1 + $0x10] sm:$0xff]  }
   0x5   :  { %v2917_v11 = vld [vmem:[%s3936_s0 + $0x4] ss:$8 sps:$4 sm:$0xff]   ;;  %v2915_v18 = vld [vmem:[%s3936_s0] ss:$8 sps:$4 sm:$0xff]   ;;  %v2921_v20 = vld [vmem:[%s3936_s0 + $0x14] ss:$8 sps:$4 sm:$0xff]  }
   0x6   :  { %v2920_v12 = vld [vmem:[%s3936_s0 + $0x84] ss:$8 sps:$4 sm:$0xff]   ;;  %290 = vmatprep.mubr.bf16.mxu0 %v2917_v11  ;;  %v2918_v19 = vld [vmem:[%s3936_s0 + $0x80] ss:$8 sps:$4 sm:$0xff]   ;;  %v2923_v21 = vld [vmem:[%s3936_s0 + $0x94] ss:$8 sps:$4 sm:$0xff]  }
   0x7   :  { %2378 = vmatpush3.bf16.msra.mxu0 %v2902_v3  ;;  %2442 = vmatpush3.bf16.msra.mxu1 %v2902_v3  ;;  %v3229_v14 = vld [vmem:[%s3937_s1 + $0x48] sm:$0xff]   ;;  %v3243_v16 = vld [vmem:[%s3937_s1 + $0x40] sm:$0xff]   ;;  %v2925_v22 = vld [vmem:[%s3936_s0 + $0x10] ss:$8 sps:$4 sm:$0xff]  }
   0x8   :  { %2379 = vmatprep.subr.bf16.mxu0 %v2903_v4  ;;  %2443 = vmatprep.subr.bf16.mxu1 %v2903_v4  ;;  %v3236_v15 = vld [vmem:[%s3937_s1 + $0x8] sm:$0xff]   ;;  %v3250_v17 = vld [vmem:[%s3937_s1] sm:$0xff]   ;;  %v2926_v23 = vld [vmem:[%s3936_s0 + $0x90] ss:$8 sps:$4 sm:$0xff]  }
   0x9   :  { %484 = vmatprep.mubr.bf16.mxu1 %v2920_v12  ;;  %v2927_v24 = vld [vmem:[%s3936_s0 + $0x24] ss:$8 sps:$4 sm:$0xff]   ;;  %v2931_v26 = vld [vmem:[%s3936_s0 + $0x20] ss:$8 sps:$4 sm:$0xff]   ;;  %v2933_v28 = vld [vmem:[%s3936_s0 + $0x34] ss:$8 sps:$4 sm:$0xff]  }
   0xa   :  { %v2929_v25 = vld [vmem:[%s3936_s0 + $0xa4] ss:$8 sps:$4 sm:$0xff]   ;;  %v2932_v27 = vld [vmem:[%s3936_s0 + $0xa0] ss:$8 sps:$4 sm:$0xff]   ;;  %v2935_v29 = vld [vmem:[%s3936_s0 + $0xb4] ss:$8 sps:$4 sm:$0xff]  }
   0xb   :  { %2380 = vmatpush3.bf16.msra.mxu0 %v3176_v5  ;;  %2444 = vmatpush3.bf16.msra.mxu1 %v3176_v5  ;;  %v2937_v30 = vld [vmem:[%s3936_s0 + $0x30] ss:$8 sps:$4 sm:$0xff]   ;;  %v2939_v32 = vld [vmem:[%s3936_s0 + $0x44] ss:$8 sps:$4 sm:$0xff]   ;;  %v2943_v34 = vld [vmem:[%s3936_s0 + $0x40] ss:$8 sps:$4 sm:$0xff]  }
   0xc   :  { %2381 = vmatprep.subr.bf16.mxu0 %v3181_v6  ;;  %2445 = vmatprep.subr.bf16.mxu1 %v3181_v6  ;;  %v2938_v31 = vld [vmem:[%s3936_s0 + $0xb0] ss:$8 sps:$4 sm:$0xff]   ;;  %v2941_v33 = vld [vmem:[%s3936_s0 + $0xc4] ss:$8 sps:$4 sm:$0xff]   ;;  %v2944_v35 = vld [vmem:[%s3936_s0 + $0xc0] ss:$8 sps:$4 sm:$0xff]  }
   0xd   :  { %v2945_v36 = vld [vmem:[%s3936_s0 + $0x54] ss:$8 sps:$4 sm:$0xff]   ;;  %v2949_v38 = vld [vmem:[%s3936_s0 + $0x50] ss:$8 sps:$4 sm:$0xff]   ;;  %v2951_v40 = vld [vmem:[%s3936_s0 + $0x64] ss:$8 sps:$4 sm:$0xff]  }
   0xe   :  { %v2947_v37 = vld [vmem:[%s3936_s0 + $0xd4] ss:$8 sps:$4 sm:$0xff]   ;;  %v2950_v39 = vld [vmem:[%s3936_s0 + $0xd0] ss:$8 sps:$4 sm:$0xff]   ;;  %v2953_v41 = vld [vmem:[%s3936_s0 + $0xe4] ss:$8 sps:$4 sm:$0xff]  }
   0xf   :  { %2382 = vmatpush3.bf16.msra.mxu0 %v3188_v7  ;;  %2446 = vmatpush3.bf16.msra.mxu1 %v3188_v7  ;;  %v2955_v42 = vld [vmem:[%s3936_s0 + $0x60] ss:$8 sps:$4 sm:$0xff]   ;;  %v2957_v44 = vld [vmem:[%s3936_s0 + $0x74] ss:$8 sps:$4 sm:$0xff]   ;;  %v2961_v46 = vld [vmem:[%s3936_s0 + $0x70] ss:$8 sps:$4 sm:$0xff]  }
  0x10   :  { %2383 = vmatprep.subr.bf16.mxu0 %v3195_v8  ;;  %2447 = vmatprep.subr.bf16.mxu1 %v3195_v8  ;;  %v2956_v43 = vld [vmem:[%s3936_s0 + $0xe0] ss:$8 sps:$4 sm:$0xff]   ;;  %v2959_v45 = vld [vmem:[%s3936_s0 + $0xf4] ss:$8 sps:$4 sm:$0xff]   ;;  %v2962_v47 = vld [vmem:[%s3936_s0 + $0xf0] ss:$8 sps:$4 sm:$0xff]  }
  0x11   :  { %v2965_v48 = vld [vmem:[%s3936_s0 + $0x104] ss:$8 sps:$4 sm:$0xff]   ;;  %v2963_v50 = vld [vmem:[%s3936_s0 + $0x100] ss:$8 sps:$4 sm:$0xff]   ;;  %v2969_v52 = vld [vmem:[%s3936_s0 + $0x114] ss:$8 sps:$4 sm:$0xff]  }
  0x12   :  { %v2968_v49 = vld [vmem:[%s3936_s0 + $0x184] ss:$8 sps:$4 sm:$0xff]   ;;  %v2966_v51 = vld [vmem:[%s3936_s0 + $0x180] ss:$8 sps:$4 sm:$0xff]   ;;  %v2971_v53 = vld [vmem:[%s3936_s0 + $0x194] ss:$8 sps:$4 sm:$0xff]  }
  0x13   :  { %2384 = vmatpush3.bf16.msra.mxu0 %v3202_v9  ;;  %2448 = vmatpush3.bf16.msra.mxu1 %v3202_v9  ;;  %v2973_v54 = vld [vmem:[%s3936_s0 + $0x110] ss:$8 sps:$4 sm:$0xff]   ;;  %v2975_v56 = vld [vmem:[%s3936_s0 + $0x124] ss:$8 sps:$4 sm:$0xff]  }
  0x14   :  { %2385 = vmatprep.subr.bf16.mxu0 %v3209_v10  ;;  %2449 = vmatprep.subr.bf16.mxu1 %v3209_v10  ;;  %v2974_v55 = vld [vmem:[%s3936_s0 + $0x190] ss:$8 sps:$4 sm:$0xff]   ;;  %v2977_v57 = vld [vmem:[%s3936_s0 + $0x1a4] ss:$8 sps:$4 sm:$0xff]  }
  0x17   :  { %2386 = vmatpush3.bf16.msra.mxu0 %v3222_v13  ;;  %2450 = vmatpush3.bf16.msra.mxu1 %v3222_v13 }
  0x18   :  { %2387 = vmatprep.subr.bf16.mxu0 %v3229_v14  ;;  %2451 = vmatprep.subr.bf16.mxu1 %v3229_v14 }
  0x1b   :  { %2388 = vmatpush3.bf16.msra.mxu0 %v3236_v15  ;;  %2452 = vmatpush3.bf16.msra.mxu1 %v3236_v15 }
  0x1c   :  { %2389 = vmatprep.subr.bf16.mxu0 %v3243_v16  ;;  %2453 = vmatprep.subr.bf16.mxu1 %v3243_v16 }
  0x1f   :  { %2390 = vmatpush3.bf16.msra.mxu0 %v3250_v17  ;;  %2454 = vmatpush3.bf16.msra.mxu1 %v3250_v17 }
  0x20   :  { %2503 = vmatprep.subr.bf16.mxu0 %v2899_v0  ;;  %2567 = vmatprep.subr.bf16.mxu1 %v2899_v0 }
  0x22   :  { %291 = vmatmul.mubr.bf16.vlgmr.msra.gmra.mxu0 %v2915_v18  ;;  %485 = vmatmul.mubr.bf16.vlgmr.msra.gmra.mxu1 %v2918_v19 }
  0x23   :  { %2504 = vmatpush3.bf16.msra.mxu0 %v2900_v1  ;;  %2568 = vmatpush3.bf16.msra.mxu1 %v2900_v1 }
  0x24   :  { %298 = vmatprep.mubr.bf16.mxu0 %v2921_v20  ;;  %492 = vmatprep.mubr.bf16.mxu1 %v2923_v21 }
  0x25   :  { %2505 = vmatprep.subr.bf16.mxu0 %v2901_v2  ;;  %2569 = vmatprep.subr.bf16.mxu1 %v2901_v2 }
  0x27   :  { %2506 = vmatpush3.bf16.msra.mxu0 %v2902_v3  ;;  %2570 = vmatpush3.bf16.msra.mxu1 %v2902_v3 }
  0x28   :  { %2507 = vmatprep.subr.bf16.mxu0 %v2903_v4  ;;  %2571 = vmatprep.subr.bf16.mxu1 %v2903_v4 }
  0x2a   :  { %299 = vmatmul.mubr.bf16.gmra.mxu0 %v2925_v22  ;;  %493 = vmatmul.mubr.bf16.gmra.mxu1 %v2926_v23 }
  0x2b   :  { %306 = vmatprep.mubr.bf16.mxu0 %v2927_v24  ;;  %500 = vmatprep.mubr.bf16.mxu1 %v2929_v25 }
  0x2c   :  { %2508 = vmatpush3.bf16.msra.mxu0 %v3176_v5  ;;  %2572 = vmatpush3.bf16.msra.mxu1 %v3176_v5 }
  0x2d   :  { %2509 = vmatprep.subr.bf16.mxu0 %v3181_v6  ;;  %2573 = vmatprep.subr.bf16.mxu1 %v3181_v6 }
  0x30   :  { %2510 = vmatpush3.bf16.msra.mxu0 %v3188_v7  ;;  %2574 = vmatpush3.bf16.msra.mxu1 %v3188_v7 }
  0x31   :  { %2511 = vmatprep.subr.bf16.mxu0 %v3195_v8  ;;  %2575 = vmatprep.subr.bf16.mxu1 %v3195_v8 }
  0x32   :  { %307 = vmatmul.mubr.bf16.gmra.mxu0 %v2931_v26  ;;  %501 = vmatmul.mubr.bf16.gmra.mxu1 %v2932_v27 }
  0x33   :  { %314 = vmatprep.mubr.bf16.mxu0 %v2933_v28  ;;  %508 = vmatprep.mubr.bf16.mxu1 %v2935_v29 }
  0x34   :  { %2512 = vmatpush3.bf16.msra.mxu0 %v3202_v9  ;;  %2576 = vmatpush3.bf16.msra.mxu1 %v3202_v9 }
  0x35   :  { %2513 = vmatprep.subr.bf16.mxu0 %v3209_v10  ;;  %2577 = vmatprep.subr.bf16.mxu1 %v3209_v10 }
  0x38   :  { %2514 = vmatpush3.bf16.msra.mxu0 %v3222_v13  ;;  %2578 = vmatpush3.bf16.msra.mxu1 %v3222_v13 }
  0x39   :  { %2515 = vmatprep.subr.bf16.mxu0 %v3229_v14  ;;  %2579 = vmatprep.subr.bf16.mxu1 %v3229_v14 }
  0x3a   :  { %315 = vmatmul.mubr.bf16.gmra.mxu0 %v2937_v30  ;;  %509 = vmatmul.mubr.bf16.gmra.mxu1 %v2938_v31 }
  0x3b   :  { %322 = vmatprep.mubr.bf16.mxu0 %v2939_v32  ;;  %516 = vmatprep.mubr.bf16.mxu1 %v2941_v33 }
  0x3c   :  { %2516 = vmatpush3.bf16.msra.mxu0 %v3236_v15  ;;  %2580 = vmatpush3.bf16.msra.mxu1 %v3236_v15 }
  0x3d   :  { %2517 = vmatprep.subr.bf16.mxu0 %v3243_v16  ;;  %2581 = vmatprep.subr.bf16.mxu1 %v3243_v16 }
  0x40   :  { %2518 = vmatpush3.bf16.msra.mxu0 %v3250_v17  ;;  %2582 = vmatpush3.bf16.msra.mxu1 %v3250_v17 }
  0x42   :  { %323 = vmatmul.mubr.bf16.gmra.mxu0 %v2943_v34  ;;  %517 = vmatmul.mubr.bf16.gmra.mxu1 %v2944_v35 }
  0x43   :  { %330 = vmatprep.mubr.bf16.mxu0 %v2945_v36  ;;  %524 = vmatprep.mubr.bf16.mxu1 %v2947_v37 }
  0x4a   :  { %331 = vmatmul.mubr.bf16.gmra.mxu0 %v2949_v38  ;;  %525 = vmatmul.mubr.bf16.gmra.mxu1 %v2950_v39 }
  0x4b   :  { %338 = vmatprep.mubr.bf16.mxu0 %v2951_v40  ;;  %532 = vmatprep.mubr.bf16.mxu1 %v2953_v41 }
  0x52   :  { %339 = vmatmul.mubr.bf16.gmra.mxu0 %v2955_v42  ;;  %533 = vmatmul.mubr.bf16.gmra.mxu1 %v2956_v43 }
  0x53   :  { %346 = vmatprep.mubr.bf16.mxu0 %v2957_v44  ;;  %540 = vmatprep.mubr.bf16.mxu1 %v2959_v45 }
  0x5a   :  { %347 = vmatmul.mubr.bf16.gmra.mxu0 %v2961_v46  ;;  %541 = vmatmul.mubr.bf16.gmra.mxu1 %v2962_v47 }
  0x5b   :  { %694 = vmatprep.mubr.bf16.mxu0 %v2965_v48  ;;  %904 = vmatprep.mubr.bf16.mxu1 %v2968_v49 }
  0x62   :  { %695 = vmatmul.mubr.bf16.vlgmr.msra.gmra.mxu0 %v2963_v50  ;;  %905 = vmatmul.mubr.bf16.vlgmr.msra.gmra.mxu1 %v2966_v51 }
  0x63   :  { %702 = vmatprep.mubr.bf16.mxu0 %v2969_v52  ;;  %912 = vmatprep.mubr.bf16.mxu1 %v2971_v53 }
  0x6a   :  { %703 = vmatmul.mubr.bf16.gmra.mxu0 %v2973_v54  ;;  %913 = vmatmul.mubr.bf16.gmra.mxu1 %v2974_v55 }
  0x6b   :  { %14 = vsyncpa [#allocation3], 0  ;;  %710 = vmatprep.mubr.bf16.mxu0 %v2975_v56  ;;  %920 = vmatprep.mubr.bf16.mxu1 %v2977_v57  ;;  %v2979_v58 = vld [vmem:[%s3936_s0 + $0x120] ss:$8 sps:$4 sm:$0xff]   ;;  %v2981_v60 = vld [vmem:[%s3936_s0 + $0x134] ss:$8 sps:$4 sm:$0xff]  }
  0x6c   :  { %v2980_v59 = vld [vmem:[%s3936_s0 + $0x1a0] ss:$8 sps:$4 sm:$0xff]   ;;  %v2983_v61 = vld [vmem:[%s3936_s0 + $0x1b4] ss:$8 sps:$4 sm:$0xff]   ;;  %v2985_v62 = vld [vmem:[%s3936_s0 + $0x130] ss:$8 sps:$4 sm:$0xff]  }
  0x6d   :  { %v2986_v63 = vld [vmem:[%s3936_s0 + $0x1b0] ss:$8 sps:$4 sm:$0xff]   ;;  %v2987_v0 = vld [vmem:[%s3936_s0 + $0x144] ss:$8 sps:$4 sm:$0xff]   ;;  %v2991_v2 = vld [vmem:[%s3936_s0 + $0x140] ss:$8 sps:$4 sm:$0xff]  }
  0x6e   :  { %v2989_v1 = vld [vmem:[%s3936_s0 + $0x1c4] ss:$8 sps:$4 sm:$0xff]   ;;  %v2992_v3 = vld [vmem:[%s3936_s0 + $0x1c0] ss:$8 sps:$4 sm:$0xff]   ;;  %v2993_v4 = vld [vmem:[%s3936_s0 + $0x154] ss:$8 sps:$4 sm:$0xff]  }
  0x6f   :  { %v2995_v5 = vld [vmem:[%s3936_s0 + $0x1d4] ss:$8 sps:$4 sm:$0xff]   ;;  %v2997_v6 = vld [vmem:[%s3936_s0 + $0x150] ss:$8 sps:$4 sm:$0xff]   ;;  %v2999_v8 = vld [vmem:[%s3936_s0 + $0x164] ss:$8 sps:$4 sm:$0xff]  }
  0x70   :  { %v2998_v7 = vld [vmem:[%s3936_s0 + $0x1d0] ss:$8 sps:$4 sm:$0xff]   ;;  %v3001_v9 = vld [vmem:[%s3936_s0 + $0x1e4] ss:$8 sps:$4 sm:$0xff]   ;;  %v3003_v10 = vld [vmem:[%s3936_s0 + $0x160] ss:$8 sps:$4 sm:$0xff]  }
  0x71   :  { %v3004_v11 = vld [vmem:[%s3936_s0 + $0x1e0] ss:$8 sps:$4 sm:$0xff]   ;;  %v3005_v12 = vld [vmem:[%s3936_s0 + $0x174] ss:$8 sps:$4 sm:$0xff]   ;;  %v3009_v16 = vld [vmem:[%s3936_s0 + $0x170] ss:$8 sps:$4 sm:$0xff]  }
  0x72   :  { %711 = vmatmul.mubr.bf16.gmra.mxu0 %v2979_v58  ;;  %921 = vmatmul.mubr.bf16.gmra.mxu1 %v2980_v59  ;;  %v3007_v13 = vld [vmem:[%s3936_s0 + $0x1f4] ss:$8 sps:$4 sm:$0xff]   ;;  %v3010_v17 = vld [vmem:[%s3936_s0 + $0x1f0] ss:$8 sps:$4 sm:$0xff]   ;;  %v3015_v20 = vld [vmem:[%s3939_s3 + $0x68] sm:$0xff]   ;;  %vm3106_vm0 = vmmov 0  }
  0x73   :  { %718 = vmatprep.mubr.bf16.mxu0 %v2981_v60  ;;  %928 = vmatprep.mubr.bf16.mxu1 %v2983_v61  ;;  %v3011_v14 = vld [vmem:[%s3939_s3 + $0x78] sm:$0xff]   ;;  %v3013_v18 = vld [vmem:[%s3939_s3 + $0x70] sm:$0xff]   ;;  %v3016_v21 = vld [vmem:[%s3939_s3 + $0x28] sm:$0xff]   ;;  %s3107_s17 = smov [#allocation2]  }
  0x74   :  { %v3012_v15 = vld [vmem:[%s3939_s3 + $0x38] sm:$0xff]   ;;  %2716 = vmatprep.subr.bf16.mxu0 %v3011_v14  ;;  %v3014_v19 = vld [vmem:[%s3939_s3 + $0x30] sm:$0xff]   ;;  %v3018_v22 = vld [vmem:[%s3939_s3 + $0x20] sm:$0xff]   ;;  %s2067_s18 = sshll.u32 %s3107_s17, 4  ;;  %s2068_s18 = int_to_ptr.vmem [resolvable:$true] %s2067_s18 }
  0x75   :  { %2736 = vmatprep.subr.bf16.mxu1 %v3012_v15  ;;  %2717 = vmatpush3.bf16.msra.mxu0 %v3011_v14  ;;  %v3020_v23 = vld [vmem:[%s3939_s3 + $0x18] sm:$0xff]   ;;  %v3017_v24 = vld [vmem:[%s3939_s3 + $0x60] sm:$0xff]   ;;  %v3021_v25 = vld [vmem:[%s3939_s3 + $0x10] sm:$0xff]   ;;  %p3088_p1 = scmp.lt.s32.totalorder %s2068_s18, %s2068_s18 }
  0x76   :  { %2737 = vmatpush3.bf16.msra.mxu1 %v3012_v15  ;;  %2718 = vmatprep.subr.bf16.mxu0 %v3013_v18  ;;  %v3023_v26 = vld [vmem:[%s3939_s3 + $0x8] sm:$0xff]   ;;  %v3019_v27 = vld [vmem:[%s3939_s3 + $0x58] sm:$0xff]   ;;  %v3024_v28 = vld [vmem:[%s3939_s3] sm:$0xff]  }
  0x77   :  { %2738 = vmatprep.subr.bf16.mxu1 %v3014_v19  ;;  %v3022_v29 = vld [vmem:[%s3939_s3 + $0x50] sm:$0xff]   ;;  %v3025_v30 = vld [vmem:[%s3939_s3 + $0x48] sm:$0xff]   ;;  %v3026_v31 = vld [vmem:[%s3939_s3 + $0x40] sm:$0xff]  }
  0x78   :  { %v3515_v32 = vld [vmem:[%s3939_s3 + $0xb8] sm:$0xff]  }
  0x79   :  { %2719 = vmatpush3.bf16.msra.mxu0 %v3013_v18  ;;  %v3521_v33 = vld [vmem:[%s3939_s3 + $0xf8] sm:$0xff]  }
  0x7a   :  { %719 = vmatmul.mubr.bf16.gmra.mxu0 %v2985_v62  ;;  %929 = vmatmul.mubr.bf16.gmra.mxu1 %v2986_v63 }
  0x7b   :  { %726 = vmatprep.mubr.bf16.mxu0 %v2987_v0  ;;  %936 = vmatprep.mubr.bf16.mxu1 %v2989_v1 }
  0x7c   :  { %2739 = vmatpush3.bf16.msra.mxu1 %v3014_v19  ;;  %2720 = vmatprep.subr.bf16.mxu0 %v3015_v20 }
  0x7d   :  { %2740 = vmatprep.subr.bf16.mxu1 %v3016_v21  ;;  %2721 = vmatpush3.bf16.msra.mxu0 %v3015_v20 }
  0x7e   :  { %2722 = vmatprep.subr.bf16.mxu0 %v3017_v24 }
  0x80   :  { %2741 = vmatpush3.bf16.msra.mxu1 %v3016_v21 }
  0x81   :  { %2742 = vmatprep.subr.bf16.mxu1 %v3018_v22  ;;  %2723 = vmatpush3.bf16.msra.mxu0 %v3017_v24 }
  0x82   :  { %727 = vmatmul.mubr.bf16.gmra.mxu0 %v2991_v2  ;;  %937 = vmatmul.mubr.bf16.gmra.mxu1 %v2992_v3 }
  0x83   :  { %734 = vmatprep.mubr.bf16.mxu0 %v2993_v4  ;;  %944 = vmatprep.mubr.bf16.mxu1 %v2995_v5 }
  0x84   :  { %2743 = vmatpush3.bf16.msra.mxu1 %v3018_v22  ;;  %2724 = vmatprep.subr.bf16.mxu0 %v3019_v27 }
  0x85   :  { %2744 = vmatprep.subr.bf16.mxu1 %v3020_v23  ;;  %2725 = vmatpush3.bf16.msra.mxu0 %v3019_v27 }
  0x86   :  { %2726 = vmatprep.subr.bf16.mxu0 %v3022_v29 }
  0x88   :  { %2745 = vmatpush3.bf16.msra.mxu1 %v3020_v23 }
  0x89   :  { %2746 = vmatprep.subr.bf16.mxu1 %v3021_v25  ;;  %2727 = vmatpush3.bf16.msra.mxu0 %v3022_v29 }
  0x8a   :  { %735 = vmatmul.mubr.bf16.gmra.mxu0 %v2997_v6  ;;  %945 = vmatmul.mubr.bf16.gmra.mxu1 %v2998_v7 }
  0x8b   :  { %742 = vmatprep.mubr.bf16.mxu0 %v2999_v8  ;;  %952 = vmatprep.mubr.bf16.mxu1 %v3001_v9 }
  0x8c   :  { %2747 = vmatpush3.bf16.msra.mxu1 %v3021_v25  ;;  %2728 = vmatprep.subr.bf16.mxu0 %v3025_v30 }
  0x8d   :  { %2748 = vmatprep.subr.bf16.mxu1 %v3023_v26  ;;  %2729 = vmatpush3.bf16.msra.mxu0 %v3025_v30 }
  0x8e   :  { %2730 = vmatprep.subr.bf16.mxu0 %v3026_v31 }
  0x90   :  { %2749 = vmatpush3.bf16.msra.mxu1 %v3023_v26 }
  0x91   :  { %2750 = vmatprep.subr.bf16.mxu1 %v3024_v28  ;;  %2731 = vmatpush3.bf16.msra.mxu0 %v3026_v31 }
  0x92   :  { %743 = vmatmul.mubr.bf16.gmra.mxu0 %v3003_v10  ;;  %953 = vmatmul.mubr.bf16.gmra.mxu1 %v3004_v11 }
  0x93   :  { %750 = vmatprep.mubr.bf16.mxu0 %v3005_v12  ;;  %960 = vmatprep.mubr.bf16.mxu1 %v3007_v13 }
  0x94   :  { %2751 = vmatpush3.bf16.msra.mxu1 %v3024_v28  ;;  %2756 = vmatprep.subr.bf16.mxu0 %v3515_v32 }
  0x95   :  { %2776 = vmatprep.subr.bf16.mxu1 %v3521_v33 }
  0x9a   :  { %751 = vmatmul.mubr.bf16.gmra.mxu0 %v3009_v16  ;;  %961 = vmatmul.mubr.bf16.gmra.mxu1 %v3010_v17 }
  0xe2   :  { %v2391_v34 = vpop.f32.mrf.mxu0  ;;  %v2455_v35 = vpop.f32.mrf.mxu1 }
  0xe4   :  { %v2392_v36 = vpop.f32.mrf.mxu0  ;;  %v2456_v37 = vpop.f32.mrf.mxu1 }
  0xe5   :  { %v3524_v38 = vadd.f32 %v2392_v36, %v2391_v34  ;;  %v3526_v39 = vadd.f32 %v2456_v37, %v2455_v35 }
  0xe6   :  { %v3528_v40 = vpop.f32.mrf.mxu0  ;;  %v3530_v41 = vpop.f32.mrf.mxu1 }
  0xe7   :  { %v549_v42 = vmax.f32 %v3524_v38, %v3526_v39 }
  0xe8   :  { %v3534_v43 = vpop.f32.mrf.mxu0  ;;  %v3536_v44 = vpop.f32.mrf.mxu1 }
  0xea   :  { %v2397_v45 = vpop.f32.mrf.mxu0  ;;  %v2461_v46 = vpop.f32.mrf.mxu1 }
  0xec   :  { %v2398_v47 = vpop.f32.mrf.mxu0  ;;  %v2462_v48 = vpop.f32.mrf.mxu1 }
  0xed   :  { %v3538_v49 = vadd.f32 %v2398_v47, %v2397_v45  ;;  %v3540_v50 = vadd.f32 %v2462_v48, %v2461_v46 }
  0xee   :  { %v3542_v51 = vpop.f32.mrf.mxu0  ;;  %v3544_v52 = vpop.f32.mrf.mxu1 }
  0xf0   :  { %v3548_v54 = vpop.f32.mrf.mxu0  ;;  %v3550_v55 = vpop.f32.mrf.mxu1 }
  0xf1   :  { %v2466_v38 = vadd.f32 %v3550_v55, %v3544_v52 }
  0xf2   :  { %v2403_v56 = vpop.f32.mrf.mxu0  ;;  %v2467_v57 = vpop.f32.mrf.mxu1 }
  0xf4   :  { %v2404_v58 = vpop.f32.mrf.mxu0  ;;  %v2468_v59 = vpop.f32.mrf.mxu1 }
  0xf5   :  { %v3552_v60 = vadd.f32 %v2404_v58, %v2403_v56  ;;  %v3554_v61 = vadd.f32 %v2468_v59, %v2467_v57 }
  0xf6   :  { %v3556_v62 = vpop.f32.mrf.mxu0  ;;  %v3558_v63 = vpop.f32.mrf.mxu1 }
  0xf8   :  { %v3562_v1 = vpop.f32.mrf.mxu0  ;;  %v3564_v2 = vpop.f32.mrf.mxu1 }
  0xfa   :  { %v2409_v3 = vpop.f32.mrf.mxu0  ;;  %v2473_v4 = vpop.f32.mrf.mxu1 }
  0xfc   :  { %v2410_v5 = vpop.f32.mrf.mxu0  ;;  %v2474_v6 = vpop.f32.mrf.mxu1 }
  0xfd   :  { %v3566_v7 = vadd.f32 %v2410_v5, %v2409_v3  ;;  %v3568_v8 = vadd.f32 %v2474_v6, %v2473_v4 }
  0xfe   :  { %v3570_v9 = vpop.f32.mrf.mxu0  ;;  %v3572_v10 = vpop.f32.mrf.mxu1 }
 0x100   :  { %v3576_v12 = vpop.f32.mrf.mxu0  ;;  %v3578_v13 = vpop.f32.mrf.mxu1 }
 0x102   :  { %v2415_v14 = vpop.f32.mrf.mxu0  ;;  %v2479_v15 = vpop.f32.mrf.mxu1 }
 0x104   :  { %v2416_v16 = vpop.f32.mrf.mxu0  ;;  %v2480_v17 = vpop.f32.mrf.mxu1 }
 0x105   :  { %v3580_v18 = vadd.f32 %v2416_v16, %v2415_v14  ;;  %v3582_v19 = vadd.f32 %v2480_v17, %v2479_v15 }
 0x106   :  { %v3584_v20 = vpop.f32.mrf.mxu0  ;;  %v3586_v21 = vpop.f32.mrf.mxu1 }
 0x108   :  { %v3590_v23 = vpop.f32.mrf.mxu0  ;;  %v3592_v24 = vpop.f32.mrf.mxu1 }
 0x10a   :  { %v2421_v25 = vpop.f32.mrf.mxu0  ;;  %v2485_v26 = vpop.f32.mrf.mxu1 }
 0x10c   :  { %v2422_v27 = vpop.f32.mrf.mxu0  ;;  %v2486_v28 = vpop.f32.mrf.mxu1 }
 0x10d   :  { %v3594_v29 = vadd.f32 %v2422_v27, %v2421_v25  ;;  %v3596_v30 = vadd.f32 %v2486_v28, %v2485_v26 }
 0x10e   :  { %v2424_v31 = vpop.f32.mrf.mxu0  ;;  %v2488_v34 = vpop.f32.mrf.mxu1 }
 0x110   :  { %v2425_v36 = vpop.f32.mrf.mxu0  ;;  %v2489_v37 = vpop.f32.mrf.mxu1 }
 0x111   :  { %v3600_v45 = vadd.f32 %v2425_v36, %v2424_v31  ;;  %v3602_v46 = vadd.f32 %v2489_v37, %v2488_v34 }
 0x112   :  { %v2427_v47 = vpop.f32.mrf.mxu0  ;;  %v2491_v48 = vpop.f32.mrf.mxu1 }
 0x114   :  { %v2428_v57 = vpop.f32.mrf.mxu0  ;;  %v2492_v58 = vpop.f32.mrf.mxu1 }
 0x115   :  { %v3606_v59 = vadd.f32 %v2428_v57, %v2427_v47  ;;  %v3608_v3 = vadd.f32 %v2492_v58, %v2491_v48 }
 0x116   :  { %v3610_v4 = vpop.f32.mrf.mxu0  ;;  %v3612_v5 = vpop.f32.mrf.mxu1 }
 0x118   :  { %v3616_v14 = vpop.f32.mrf.mxu0  ;;  %v3618_v15 = vpop.f32.mrf.mxu1 }
 0x11a   :  { %v2433_v16 = vpop.f32.mrf.mxu0  ;;  %v2497_v17 = vpop.f32.mrf.mxu1 }
 0x11c   :  { %v2434_v25 = vpop.f32.mrf.mxu0  ;;  %v2498_v26 = vpop.f32.mrf.mxu1 }
 0x11d   :  { %v3620_v27 = vadd.f32 %v2434_v25, %v2433_v16  ;;  %v3622_v28 = vadd.f32 %v2498_v26, %v2497_v17  ;;  %v2396_v16 = vadd.f32 %v3534_v43, %v3528_v40  ;;  %v2460_v17 = vadd.f32 %v3536_v44, %v3530_v41  ;;  %v3644_v40 = vld [vmem:[%s3938_s2] ss:$0 sm:$0xff] }
 0x11e   :  { %v3624_v31 = vpop.f32.mrf.mxu0  ;;  %v3626_v34 = vpop.f32.mrf.mxu1 }
 0x11f   :  { %3947 = vst [vmem:[#allocation5_spill] sm:$0xff] %v3622_v28  ;;  %v550_v0 = vmax.f32 %v2396_v16, %v2460_v17 }
 0x120   :  { %v3630_v37 = vpop.f32.mrf.mxu0  ;;  %v3632_v47 = vpop.f32.mrf.mxu1 }
 0x122   :  { %v2519_v48 = vpop.f32.mrf.mxu0  ;;  %v2583_v57 = vpop.f32.mrf.mxu1 }
 0x124   :  { %v2520_v58 = vpop.f32.mrf.mxu0  ;;  %v2584_v6 = vpop.f32.mrf.mxu1 }
 0x125   :  { %v2521_v25 = vadd.f32 %v2520_v58, %v2519_v48  ;;  %v2585_v35 = vadd.f32 %v2584_v6, %v2583_v57  ;;  %v2402_v58 = vadd.f32 %v3548_v54, %v3542_v51 }
 0x126   :  { %v2522_v26 = vpop.f32.mrf.mxu0  ;;  %v2586_v56 = vpop.f32.mrf.mxu1 }
 0x127   :  { %v759_v36 = vmax.f32 %v549_v42, %v2521_v25 }
 0x128   :  { %v2523_v22 = vpop.f32.mrf.mxu0  ;;  %v2587_v11 = vpop.f32.mrf.mxu1 }
 0x129   :  { %v969_v53 = vmax.f32 %v759_v36, %v2585_v35  ;;  %v2524_v28 = vadd.f32 %v2523_v22, %v2522_v26  ;;  %v2588_v48 = vadd.f32 %v2587_v11, %v2586_v56 }
 0x12a   :  { %v2525_v43 = vpop.f32.mrf.mxu0  ;;  %v2589_v41 = vpop.f32.mrf.mxu1 }
 0x12b   :  { %v760_v44 = vmax.f32 %v550_v0, %v2524_v28  ;;  %v992_v35 = vadd.f32 %v3644_v40, %v969_v53  ;;  %v3948_v0 = vmax.f32 %v3538_v49, %v3540_v50  ;;  %v552_v28 = vmax.f32 %v2402_v58, %v2466_v38 }
 0x12c   :  { %v2526_v39 = vpop.f32.mrf.mxu0  ;;  %v2590_v42 = vpop.f32.mrf.mxu1  ;;  %v2472_v49 = vadd.f32 %v3564_v2, %v3558_v63 }
 0x12d   :  { %v970_v22 = vmax.f32 %v760_v44, %v2588_v48  ;;  %v2527_v6 = vadd.f32 %v2526_v39, %v2525_v43  ;;  %v2591_v56 = vadd.f32 %v2590_v42, %v2589_v41  ;;  %v1008_v17 = vmax.f32 %v992_v35, 0.0 }
 0x12e   :  { %v2528_v36 = vpop.f32.mrf.mxu0  ;;  %v2592_v57 = vpop.f32.mrf.mxu1  ;;  %v2408_v39 = vadd.f32 %v3562_v1, %v3556_v62 }
 0x12f   :  { %v993_v16 = vadd.f32 %v3644_v40, %v970_v22  ;;  %v761_v11 = vmax.f32 %v3948_v0, %v2527_v6 }
 0x130   :  { %v2529_v51 = vpop.f32.mrf.mxu0  ;;  %v2593_v54 = vpop.f32.mrf.mxu1  ;;  %v554_v62 = vmax.f32 %v2408_v39, %v2472_v49 }
 0x131   :  { %v1009_v52 = vmax.f32 %v993_v16, 0.0  ;;  %v971_v55 = vmax.f32 %v761_v11, %v2591_v56  ;;  %v2530_v25 = vadd.f32 %v2529_v51, %v2528_v36  ;;  %v2594_v43 = vadd.f32 %v2593_v54, %v2592_v57 }
 0x132   :  { %v2531_v26 = vpop.f32.mrf.mxu0  ;;  %v2595_v53 = vpop.f32.mrf.mxu1  ;;  %v3949_v36 = vmax.f32 %v3552_v60, %v3554_v61  ;;  %v2414_v60 = vadd.f32 %v3576_v12, %v3570_v9  ;;  %v2478_v61 = vadd.f32 %v3578_v13, %v3572_v10  ;;  %v3032_v10 = vld [vmem:[%s3939_s3 + $0xe8] sm:$0xff]  }
 0x133   :  { %v762_v44 = vmax.f32 %v552_v28, %v2530_v25  ;;  %v1024_v48 = vpack.c.bf16 %v1009_v52, %v1008_v17  ;;  %v994_v58 = vadd.f32 %v3644_v40, %v971_v55  ;;  %v3030_v55 = vld [vmem:[%s3939_s3 + $0xf0] sm:$0xff]  }
 0x134   :  { %v2532_v50 = vpop.f32.mrf.mxu0  ;;  %v2596_v41 = vpop.f32.mrf.mxu1  ;;  %v556_v13 = vmax.f32 %v2414_v60, %v2478_v61 }
 0x135   :  { %v972_v38 = vmax.f32 %v762_v44, %v2594_v43  ;;  %v2533_v42 = vadd.f32 %v2532_v50, %v2531_v26  ;;  %2752 = vmatprep.mubr.bf16.mxu1 %v1024_v48  ;;  %v2597_v16 = vadd.f32 %v2596_v41, %v2595_v53  ;;  %v1010_v63 = vmax.f32 %v994_v58, 0.0 }
 0x136   :  { %v2534_v35 = vpop.f32.mrf.mxu0  ;;  %v2598_v22 = vpop.f32.mrf.mxu1  ;;  %v3950_v50 = vmax.f32 %v3566_v7, %v3568_v8  ;;  %v3034_v8 = vld [vmem:[%s3939_s3 + $0xe0] sm:$0xff]  }
 0x137   :  { %v995_v6 = vadd.f32 %v3644_v40, %v972_v38  ;;  %v763_v57 = vmax.f32 %v3949_v36, %v2533_v42 }
 0x138   :  { %v2535_v1 = vpop.f32.mrf.mxu0  ;;  %v2599_v0 = vpop.f32.mrf.mxu1 }
 0x139   :  { %v1011_v2 = vmax.f32 %v995_v6, 0.0  ;;  %v973_v11 = vmax.f32 %v763_v57, %v2597_v16  ;;  %v2536_v56 = vadd.f32 %v2535_v1, %v2534_v35  ;;  %v2600_v52 = vadd.f32 %v2599_v0, %v2598_v22 }
 0x13a   :  { %v2537_v28 = vpop.f32.mrf.mxu0  ;;  %v2601_v51 = vpop.f32.mrf.mxu1  ;;  %v2420_v16 = vadd.f32 %v3590_v23, %v3584_v20 }
 0x13b   :  { %v1025_v54 = vpack.c.bf16 %v1011_v2, %v1010_v63  ;;  %v764_v17 = vmax.f32 %v554_v62, %v2536_v56  ;;  %v996_v53 = vadd.f32 %v3644_v40, %v973_v11  ;;  %v2484_v62 = vadd.f32 %v3592_v24, %v3586_v21  ;;  %v3036_v21 = vld [vmem:[%s3939_s3 + $0xd8] sm:$0xff]  }
 0x13c   :  { %v2538_v25 = vpop.f32.mrf.mxu0  ;;  %v2602_v26 = vpop.f32.mrf.mxu1 }
 0x13d   :  { %v974_v44 = vmax.f32 %v764_v17, %v2600_v52  ;;  %v2539_v43 = vadd.f32 %v2538_v25, %v2537_v28  ;;  %2753 = vmatmul.mubr.bf16.vlgmr.msra.gmra.mxu1 %v1025_v54  ;;  %v2603_v12 = vadd.f32 %v2602_v26, %v2601_v51  ;;  %v1012_v38 = vmax.f32 %v996_v53, 0.0 }
 0x13e   :  { %v2540_v48 = vpop.f32.mrf.mxu0  ;;  %v2604_v39 = vpop.f32.mrf.mxu1  ;;  %2777 = vmatpush3.bf16.msra.mxu1 %v3521_v33  ;;  %v3951_v17 = vmax.f32 %v3580_v18, %v3582_v19  ;;  %v558_v23 = vmax.f32 %v2420_v16, %v2484_v62  ;;  %v3029_v18 = vld [vmem:[%s3939_s3 + $0xb0] sm:$0xff]  }
 0x13f   :  { %v997_v49 = vadd.f32 %v3644_v40, %v974_v44  ;;  %v765_v9 = vmax.f32 %v3950_v50, %v2539_v43  ;;  %2778 = vmatprep.subr.bf16.mxu1 %v3030_v55  ;;  %v3038_v19 = vld [vmem:[%s3939_s3 + $0xd0] sm:$0xff]  }
 0x140   :  { %v2541_v41 = vpop.f32.mrf.mxu0  ;;  %v2605_v58 = vpop.f32.mrf.mxu1 }
 0x141   :  { %v1013_v42 = vmax.f32 %v997_v49, 0.0  ;;  %v975_v35 = vmax.f32 %v765_v9, %v2603_v12  ;;  %v2542_v22 = vadd.f32 %v2541_v41, %v2540_v48  ;;  %v2606_v57 = vadd.f32 %v2605_v58, %v2604_v39 }
 0x142   :  { %v2543_v33 = vpop.f32.mrf.mxu0  ;;  %v2607_v6 = vpop.f32.mrf.mxu1  ;;  %2779 = vmatpush3.bf16.msra.mxu1 %v3030_v55 }
 0x143   :  { %v766_v36 = vmax.f32 %v556_v13, %v2542_v22  ;;  %v1026_v7 = vpack.c.bf16 %v1013_v42, %v1012_v38  ;;  %2780 = vmatprep.subr.bf16.mxu1 %v3032_v10  ;;  %v998_v63 = vadd.f32 %v3644_v40, %v975_v35  ;;  %v3952_v38 = vmax.f32 %v3594_v29, %v3596_v30  ;;  %v3031_v35 = vld [vmem:[%s3939_s3 + $0xa8] sm:$0xff]  }
 0x144   :  { %v2544_v1 = vpop.f32.mrf.mxu0  ;;  %v2608_v0 = vpop.f32.mrf.mxu1  ;;  %v3040_v22 = vld [vmem:[%s3939_s3 + $0xc8] sm:$0xff]   ;;  %v3953_v30 = vmax.f32 %v3600_v45, %v3602_v46 }
 0x145   :  { %v976_v2 = vmax.f32 %v766_v36, %v2606_v57  ;;  %v2545_v11 = vadd.f32 %v2544_v1, %v2543_v33  ;;  %v2609_v56 = vadd.f32 %v2608_v0, %v2607_v6  ;;  %2732 = vmatprep.mubr.bf16.mxu0 %v1026_v7  ;;  %v1014_v55 = vmax.f32 %v998_v63, 0.0  ;;  %v3033_v0 = vld [vmem:[%s3939_s3 + $0xa0] sm:$0xff]  }
 0x146   :  { %v2546_v28 = vpop.f32.mrf.mxu0  ;;  %v2610_v51 = vpop.f32.mrf.mxu1  ;;  %2781 = vmatpush3.bf16.msra.mxu1 %v3032_v10  ;;  %v3042_v63 = vld [vmem:[%s3939_s3 + $0xc0] sm:$0xff]  }
 0x147   :  { %v999_v54 = vadd.f32 %v3644_v40, %v976_v2  ;;  %v767_v20 = vmax.f32 %v3951_v17, %v2545_v11  ;;  %2782 = vmatprep.subr.bf16.mxu1 %v3034_v8  ;;  %v2432_v2 = vadd.f32 %v3616_v14, %v3610_v4  ;;  %v2496_v11 = vadd.f32 %v3618_v15, %v3612_v5  ;;  %v3035_v5 = vld [vmem:[%s3939_s3 + $0x98] sm:$0xff]  }
 0x148   :  { %v2547_v24 = vpop.f32.mrf.mxu0  ;;  %v2611_v52 = vpop.f32.mrf.mxu1  ;;  %v3954_v4 = vmax.f32 %v3606_v59, %v3608_v3 }
 0x149   :  { %v1015_v60 = vmax.f32 %v999_v54, 0.0  ;;  %v977_v61 = vmax.f32 %v767_v20, %v2609_v56  ;;  %v2548_v25 = vadd.f32 %v2547_v24, %v2546_v28  ;;  %v2612_v48 = vadd.f32 %v2611_v52, %v2610_v51 }
 0x14a   :  { %v2549_v26 = vpop.f32.mrf.mxu0  ;;  %v2613_v53 = vpop.f32.mrf.mxu1  ;;  %2783 = vmatpush3.bf16.msra.mxu1 %v3034_v8  ;;  %v562_v15 = vmax.f32 %v2432_v2, %v2496_v11  ;;  %v3047_v2 = vld [vmem:[%s3941_s5 + $0x28] sm:$0xff]  }
 0x14b   :  { %v1027_v44 = vpack.c.bf16 %v1015_v60, %v1014_v55  ;;  %v768_v43 = vmax.f32 %v558_v23, %v2548_v25  ;;  %2784 = vmatprep.subr.bf16.mxu1 %v3036_v21  ;;  %v1000_v50 = vadd.f32 %v3644_v40, %v977_v61  ;;  %v3048_v11 = vld [vmem:[%s3941_s5 + $0x68] sm:$0xff]  }
 0x14c   :  { %v2550_v39 = vpop.f32.mrf.mxu0  ;;  %v2614_v49 = vpop.f32.mrf.mxu1 }
 0x14d   :  { %v978_v9 = vmax.f32 %v768_v43, %v2612_v48  ;;  %v2551_v12 = vadd.f32 %v2550_v39, %v2549_v26  ;;  %v2615_v10 = vadd.f32 %v2614_v49, %v2613_v53  ;;  %2733 = vmatmul.mubr.bf16.vlgmr.msra.gmra.mxu0 %v1027_v44  ;;  %v1016_v6 = vmax.f32 %v1000_v50, 0.0  ;;  %v3037_v44 = vld [vmem:[%s3939_s3 + $0x90] sm:$0xff]  }
 0x14e   :  { %2757 = vmatpush3.bf16.msra.mxu0 %v3515_v32  ;;  %v2552_v13 = vpop.f32.mrf.mxu0  ;;  %v2616_v41 = vpop.f32.mrf.mxu1  ;;  %2785 = vmatpush3.bf16.msra.mxu1 %v3036_v21  ;;  %v2438_v43 = vadd.f32 %v3630_v37, %v3624_v31  ;;  %v2502_v48 = vadd.f32 %v3632_v47, %v3626_v34  ;;  %v3039_v31 = vld [vmem:[%s3939_s3 + $0x88] sm:$0xff]  }
 0x14f   :  { %v1001_v58 = vadd.f32 %v3644_v40, %v978_v9  ;;  %v769_v42 = vmax.f32 %v3952_v38, %v2551_v12  ;;  %2758 = vmatprep.subr.bf16.mxu0 %v3029_v18  ;;  %2786 = vmatprep.subr.bf16.mxu1 %v3038_v19 }
 0x150   :  { %v2553_v32 = vpop.f32.mrf.mxu0  ;;  %v2617_v33 = vpop.f32.mrf.mxu1  ;;  %v564_v34 = vmax.f32 %v2438_v43, %v2502_v48 }
 0x151   :  { %v1017_v36 = vmax.f32 %v1001_v58, 0.0  ;;  %v979_v57 = vmax.f32 %v769_v42, %v2615_v10  ;;  %v2554_v7 = vadd.f32 %v2553_v32, %v2552_v13  ;;  %v2618_v62 = vadd.f32 %v2617_v33, %v2616_v41  ;;  %v3955_v41 = vld [vmem:[#allocation5_spill] sm:$0xff] }
 0x152   :  { %2759 = vmatpush3.bf16.msra.mxu0 %v3029_v18  ;;  %v2555_v8 = vpop.f32.mrf.mxu0  ;;  %v2619_v29 = vpop.f32.mrf.mxu1  ;;  %2787 = vmatpush3.bf16.msra.mxu1 %v3038_v19  ;;  %v3956_v58 = vmax.f32 %v3620_v27, %v3955_v41  ;;  %v3041_v27 = vld [vmem:[%s3939_s3 + $0x80] sm:$0xff]  }
 0x153   :  { %v770_v16 = vmax.f32 %v3953_v30, %v2554_v7  ;;  %2760 = vmatprep.subr.bf16.mxu0 %v3031_v35  ;;  %v1028_v1 = vpack.c.bf16 %v1017_v36, %v1016_v6  ;;  %2788 = vmatprep.subr.bf16.mxu1 %v3040_v22  ;;  %v1002_v56 = vadd.f32 %v3644_v40, %v979_v57 }
 0x154   :  { %v2556_v45 = vpop.f32.mrf.mxu0  ;;  %v2620_v46 = vpop.f32.mrf.mxu1 }
 0x155   :  { %v980_v28 = vmax.f32 %v770_v16, %v2618_v62  ;;  %v2557_v51 = vadd.f32 %v2556_v45, %v2555_v8  ;;  %v2621_v54 = vadd.f32 %v2620_v46, %v2619_v29  ;;  %2772 = vmatprep.mubr.bf16.mxu0 %v1028_v1  ;;  %v1018_v52 = vmax.f32 %v1002_v56, 0.0  ;;  %v3043_v62 = vld [vmem:[%s3941_s5 + $0x38] sm:$0xff]   ;;  %v3049_v45 = vld [vmem:[%s3941_s5 + $0x20] sm:$0xff]  }
 0x156   :  { %2761 = vmatpush3.bf16.msra.mxu0 %v3031_v35  ;;  %v2558_v17 = vpop.f32.mrf.mxu0  ;;  %v2622_v20 = vpop.f32.mrf.mxu1  ;;  %2789 = vmatpush3.bf16.msra.mxu1 %v3040_v22  ;;  %v3044_v1 = vld [vmem:[%s3941_s5 + $0x78] sm:$0xff]   ;;  %v3050_v46 = vld [vmem:[%s3941_s5 + $0x60] sm:$0xff]  }
 0x157   :  { %v1003_v21 = vadd.f32 %v3644_v40, %v980_v28  ;;  %v771_v14 = vmax.f32 %v3954_v4, %v2557_v51  ;;  %2762 = vmatprep.subr.bf16.mxu0 %v3033_v0  ;;  %2790 = vmatprep.subr.bf16.mxu1 %v3042_v63  ;;  %v3051_v56 = vld [vmem:[%s3941_s5 + $0x18] sm:$0xff]   ;;  %v3053_v51 = vld [vmem:[%s3941_s5 + $0x10] sm:$0xff]   ;;  %v3058_v4 = vld [vmem:[%s3941_s5 + $0x40] sm:$0xff]  }
 0x158   :  { %v2559_v23 = vpop.f32.mrf.mxu0  ;;  %v2623_v24 = vpop.f32.mrf.mxu1  ;;  %v3052_v28 = vld [vmem:[%s3941_s5 + $0x58] sm:$0xff]  }
 0x159   :  { %v1019_v55 = vmax.f32 %v1003_v21, 0.0  ;;  %v981_v60 = vmax.f32 %v771_v14, %v2621_v54  ;;  %v2560_v61 = vadd.f32 %v2559_v23, %v2558_v17  ;;  %v2624_v3 = vadd.f32 %v2623_v24, %v2622_v20  ;;  %v3054_v54 = vld [vmem:[%s3941_s5 + $0x50] sm:$0xff]   ;;  %v3055_v17 = vld [vmem:[%s3941_s5 + $0x8] sm:$0xff]   ;;  %v3057_v21 = vld [vmem:[%s3941_s5] sm:$0xff]  }
 0x15a   :  { %2763 = vmatpush3.bf16.msra.mxu0 %v3033_v0  ;;  %v2561_v25 = vpop.f32.mrf.mxu0  ;;  %v2625_v26 = vpop.f32.mrf.mxu1  ;;  %2791 = vmatpush3.bf16.msra.mxu1 %v3042_v63  ;;  %v3105_v0 = vmov 0.0   ;;  %v3046_v63 = vld [vmem:[%s3941_s5 + $0x70] sm:$0xff]   ;;  %v3056_v20 = vld [vmem:[%s3941_s5 + $0x48] sm:$0xff]  }
 0x15b   :  { %v1029_v53 = vpack.c.bf16 %v1019_v55, %v1018_v52  ;;  %v772_v59 = vmax.f32 %v562_v15, %v2560_v61  ;;  %2764 = vmatprep.subr.bf16.mxu0 %v3035_v5  ;;  %v1004_v39 = vadd.f32 %v3644_v40, %v981_v60  ;;  %2816 = vmatprep.subr.bf16.mxu1 %v3105_v0 }
 0x15c   :  { %v2562_v18 = vpop.f32.mrf.mxu0  ;;  %v2626_v19 = vpop.f32.mrf.mxu1 }
 0x15d   :  { %v982_v49 = vmax.f32 %v772_v59, %v2624_v3  ;;  %v2563_v50 = vadd.f32 %v2562_v18, %v2561_v25  ;;  %v2627_v9 = vadd.f32 %v2626_v19, %v2625_v26  ;;  %v1020_v42 = vmax.f32 %v1004_v39, 0.0 }
 0x15e   :  { %2765 = vmatpush3.bf16.msra.mxu0 %v3035_v5  ;;  %v2564_v12 = vpop.f32.mrf.mxu0  ;;  %v2628_v10 = vpop.f32.mrf.mxu1 }
 0x15f   :  { %v1005_v13 = vadd.f32 %v3644_v40, %v982_v49  ;;  %v773_v38 = vmax.f32 %v3956_v58, %v2563_v50  ;;  %2766 = vmatprep.subr.bf16.mxu0 %v3037_v44  ;;  %v2284_v58 = vld [vmem:[%s3940_s4] ss:$0 sm:$0xff] }
 0x160   :  { %v2565_v37 = vpop.f32.mrf.mxu0  ;;  %v2629_v47 = vpop.f32.mrf.mxu1 }
 0x161   :  { %v1021_v35 = vmax.f32 %v1005_v13, 0.0  ;;  %v983_v22 = vmax.f32 %v773_v38, %v2627_v9  ;;  %v2566_v32 = vadd.f32 %v2565_v37, %v2564_v12  ;;  %v2630_v6 = vadd.f32 %v2629_v47, %v2628_v10 }
 0x162   :  { %2767 = vmatpush3.bf16.msra.mxu0 %v3037_v44 }
 0x163   :  { %v774_v33 = vmax.f32 %v564_v34, %v2566_v32  ;;  %2768 = vmatprep.subr.bf16.mxu0 %v3039_v31  ;;  %v1030_v36 = vpack.c.bf16 %v1021_v35, %v1020_v42  ;;  %v1006_v57 = vadd.f32 %v3644_v40, %v983_v22 }
 0x165   :  { %v984_v7 = vmax.f32 %v774_v33, %v2630_v6  ;;  %2792 = vmatprep.mubr.bf16.mxu1 %v1030_v36  ;;  %v1022_v29 = vmax.f32 %v1006_v57, 0.0  ;;  %v3059_v33 = vld [vmem:[%s3941_s5 + $0xf8] sm:$0xff]   ;;  %v3061_v57 = vld [vmem:[%s3941_s5 + $0xf0] sm:$0xff]  }
 0x166   :  { %2769 = vmatpush3.bf16.msra.mxu0 %v3039_v31  ;;  %v3060_v36 = vld [vmem:[%s3941_s5 + $0xb8] sm:$0xff]  }
 0x167   :  { %v1007_v8 = vadd.f32 %v3644_v40, %v984_v7  ;;  %2770 = vmatprep.subr.bf16.mxu0 %v3041_v27  ;;  %v3045_v40 = vld [vmem:[%s3941_s5 + $0x30] sm:$0xff]  }
 0x168   :  { %v3062_v7 = vld [vmem:[%s3941_s5 + $0xb0] sm:$0xff]  }
 0x169   :  { %v1023_v30 = vmax.f32 %v1007_v8, 0.0  ;;  %v3063_v8 = vld [vmem:[%s3941_s5 + $0xe8] sm:$0xff]  }
 0x16a   :  { %2771 = vmatpush3.bf16.msra.mxu0 %v3041_v27 }
 0x16b   :  { %v1031_v16 = vpack.c.bf16 %v1023_v30, %v1022_v29  ;;  %2796 = vmatprep.subr.bf16.mxu0 %v3105_v0  ;;  %v3064_v29 = vld [vmem:[%s3941_s5 + $0xa8] sm:$0xff]   ;;  %v3065_v30 = vld [vmem:[%s3941_s5 + $0xe0] sm:$0xff]  }
 0x16d   :  { %2773 = vmatmul.mubr.bf16.vlgmr.msra.gmra.mxu0 %v1029_v53  ;;  %2793 = vmatmul.mubr.bf16.vlgmr.msra.gmra.mxu1 %v1031_v16  ;;  %v3066_v16 = vld [vmem:[%s3941_s5 + $0xa0] sm:$0xff]  }
 0x16e   :  { %2817 = vmatpush3.bf16.msra.mxu1 %v3043_v62  ;;  %2797 = vmatpush3.bf16.msra.mxu0 %v3044_v1  ;;  %v3067_v62 = vld [vmem:[%s3941_s5 + $0xd8] sm:$0xff]  }
 0x16f   :  { %2818 = vmatprep.subr.bf16.mxu1 %v3105_v0  ;;  %2798 = vmatprep.subr.bf16.mxu0 %v3105_v0  ;;  %v3068_v1 = vld [vmem:[%s3941_s5 + $0x98] sm:$0xff]  }
 0x170   :  { %2832 = vmatprep.mubr.msk.bf16.mxu1 %vm3106_vm0, %v3105_v0  ;;  %2812 = vmatprep.mubr.msk.bf16.mxu0 %vm3106_vm0, %v3105_v0 }
 0x172   :  { %2819 = vmatpush3.bf16.msra.mxu1 %v3045_v40  ;;  %2799 = vmatpush3.bf16.msra.mxu0 %v3046_v63  ;;  %v3069_v40 = vld [vmem:[%s3941_s5 + $0xd0] sm:$0xff]  }
 0x173   :  { %2820 = vmatprep.subr.bf16.mxu1 %v3105_v0  ;;  %2800 = vmatprep.subr.bf16.mxu0 %v3105_v0  ;;  %v3070_v63 = vld [vmem:[%s3941_s5 + $0x90] sm:$0xff]  }
 0x176   :  { %2821 = vmatpush3.bf16.msra.mxu1 %v3047_v2  ;;  %2801 = vmatpush3.bf16.msra.mxu0 %v3048_v11  ;;  %v3071_v2 = vld [vmem:[%s3941_s5 + $0xc8] sm:$0xff]  }
 0x177   :  { %2822 = vmatprep.subr.bf16.mxu1 %v3105_v0  ;;  %2802 = vmatprep.subr.bf16.mxu0 %v3105_v0  ;;  %v3072_v11 = vld [vmem:[%s3941_s5 + $0x88] sm:$0xff]  }
 0x17a   :  { %2823 = vmatpush3.bf16.msra.mxu1 %v3049_v45  ;;  %2803 = vmatpush3.bf16.msra.mxu0 %v3050_v46  ;;  %v3073_v45 = vld [vmem:[%s3941_s5 + $0xc0] sm:$0xff]  }
 0x17b   :  { %2824 = vmatprep.subr.bf16.mxu1 %v3105_v0  ;;  %2804 = vmatprep.subr.bf16.mxu0 %v3105_v0  ;;  %v3074_v46 = vld [vmem:[%s3941_s5 + $0x80] sm:$0xff]  }
 0x17e   :  { %2825 = vmatpush3.bf16.msra.mxu1 %v3051_v56  ;;  %2805 = vmatpush3.bf16.msra.mxu0 %v3052_v28 }
 0x17f   :  { %2826 = vmatprep.subr.bf16.mxu1 %v3105_v0  ;;  %2806 = vmatprep.subr.bf16.mxu0 %v3105_v0 }
 0x182   :  { %2827 = vmatpush3.bf16.msra.mxu1 %v3053_v51  ;;  %2807 = vmatpush3.bf16.msra.mxu0 %v3054_v54  ;;  %v3075_v51 = vld [vmem:[%s3943_s7 + $0x38] sm:$0xff]   ;;  %v3076_v54 = vld [vmem:[%s3943_s7 + $0x30] sm:$0xff]  }
 0x183   :  { %2828 = vmatprep.subr.bf16.mxu1 %v3105_v0  ;;  %2808 = vmatprep.subr.bf16.mxu0 %v3105_v0 }
 0x186   :  { %2829 = vmatpush3.bf16.msra.mxu1 %v3055_v17  ;;  %2809 = vmatpush3.bf16.msra.mxu0 %v3056_v20  ;;  %v3077_v17 = vld [vmem:[%s3943_s7 + $0x28] sm:$0xff]   ;;  %v3078_v20 = vld [vmem:[%s3943_s7 + $0x20] sm:$0xff]  }
 0x187   :  { %2830 = vmatprep.subr.bf16.mxu1 %v3105_v0  ;;  %2810 = vmatprep.subr.bf16.mxu0 %v3105_v0 }
 0x18a   :  { %2831 = vmatpush3.bf16.msra.mxu1 %v3057_v21  ;;  %2811 = vmatpush3.bf16.msra.mxu0 %v3058_v4  ;;  %v3079_v21 = vld [vmem:[%s3943_s7 + $0x18] sm:$0xff]   ;;  %v3080_v4 = vld [vmem:[%s3943_s7 + $0x10] sm:$0xff]  }
 0x18b   :  { %2856 = vmatprep.subr.bf16.mxu1 %v3105_v0  ;;  %2836 = vmatprep.subr.bf16.mxu0 %v3105_v0 }
 0x1fd   :  { %v2754_v14 = vpop.f32.mrf.mxu1 }
 0x1ff   :  { %v1244_v15 = vpop.f32.mrf.mxu1 }
 0x201   :  { %v2755_v24 = vpop.f32.mrf.mxu1 }
 0x203   :  { %v1247_v55 = vpop.f32.mrf.mxu1 }
 0x20d   :  { %v2734_v5 = vpop.f32.mrf.mxu0 }
 0x20e   :  { %v1253_v26 = vadd.f32 %v2754_v14, %v2734_v5  ;;  %v3081_v14 = vld [vmem:[%s3943_s7 + $0x8] sm:$0xff]   ;;  %v3082_v5 = vld [vmem:[%s3943_s7] sm:$0xff]  }
 0x20f   :  { %v1147_v23 = vpop.f32.mrf.mxu0 }
 0x210   :  { %v1245_v53 = vadd.f32 %v1244_v15, %v1147_v23 }
 0x211   :  { %v2735_v52 = vpop.f32.mrf.mxu0 }
 0x212   :  { %v1256_v44 = vadd.f32 %v2755_v24, %v2735_v52 }
 0x213   :  { %v1150_v60 = vpop.f32.mrf.mxu0 }
 0x214   :  { %v1248_v39 = vadd.f32 %v1247_v55, %v1150_v60 }
 0x22d   :  { %v2774_v61 = vpop.f32.mrf.mxu0  ;;  %v2794_v25 = vpop.f32.mrf.mxu1 }
 0x22e   :  { %v1375_v43 = vadd.f32 %v2774_v61, %v1253_v26 }
 0x22f   :  { %v1358_v59 = vpop.f32.mrf.mxu0  ;;  %v1476_v3 = vpop.f32.mrf.mxu1 }
 0x230   :  { %v1373_v48 = vadd.f32 %v1358_v59, %v1245_v53  ;;  %v1493_v12 = vadd.f32 %v2794_v25, %v1375_v43 }
 0x231   :  { %v2775_v18 = vpop.f32.mrf.mxu0  ;;  %v2795_v19 = vpop.f32.mrf.mxu1 }
 0x232   :  { %v1376_v49 = vadd.f32 %v2775_v18, %v1256_v44  ;;  %v1491_v10 = vadd.f32 %v1476_v3, %v1373_v48  ;;  %v1504_v34 = vadd.f32 %v2284_v58, %v1493_v12 }
 0x233   :  { %v1361_v50 = vpop.f32.mrf.mxu0  ;;  %v1479_v9 = vpop.f32.mrf.mxu1 }
 0x234   :  { %v1494_v13 = vadd.f32 %v2795_v19, %v1376_v49  ;;  %v1374_v41 = vadd.f32 %v1361_v50, %v1248_v39  ;;  %v1502_v37 = vadd.f32 %v2284_v58, %v1491_v10  ;;  %v2366_v10 = vld [vmem:[%s3944_s8] ss:$0 sm:$0xff] }
 0x236   :  { %v1505_v38 = vadd.f32 %v2284_v58, %v1494_v13  ;;  %v1492_v31 = vadd.f32 %v1479_v9, %v1374_v41 }
 0x238   :  { %v1503_v47 = vadd.f32 %v2284_v58, %v1492_v31  ;;  %v1507_v42 = vmax.f32 %v1504_v34, %v1505_v38 }
 0x23a   :  { %v1506_v35 = vmax.f32 %v1502_v37, %v1503_v47 }
 0x23c   :  { %v1508_v22 = vmax.f32 %v1506_v35, %v1507_v42 }
 0x23e   :  { %v1509_v32 = vmax.f32 %v1508_v22, 0.0 }
 0x240   :  { %v1510_v6 = vpack.c.bf16 %v1509_v32, %v1509_v32 }
 0x242   :  { %2833 = vmatmul.mubr.bf16.vlgmr.msra.gmra.mxu1 %v1510_v6  ;;  %v1545_v27 = vrot.slane %v1510_v6, 1  ;;  %v1848_v56 = vrot.slane %v1510_v6, 3  ;;  %v1740_v28 = vrot.slane %v1510_v6, 2 }
 0x243   :  { %2857 = vmatpush3.bf16.msra.mxu1 %v3059_v33  ;;  %2872 = vmatprep.mubr.msk.bf16.mxu1 %vm3106_vm0, %v3105_v0 }
 0x244   :  { %2813 = vmatmul.mubr.bf16.vlgmr.msra.gmra.mxu0 %v1545_v27  ;;  %2858 = vmatprep.subr.bf16.mxu1 %v3105_v0 }
 0x245   :  { %2837 = vmatpush3.bf16.msra.mxu0 %v3060_v36  ;;  %2852 = vmatprep.mubr.msk.bf16.mxu0 %vm3106_vm0, %v3105_v0 }
 0x246   :  { %2838 = vmatprep.subr.bf16.mxu0 %v3105_v0 }
 0x247   :  { %2859 = vmatpush3.bf16.msra.mxu1 %v3061_v57 }
 0x248   :  { %2860 = vmatprep.subr.bf16.mxu1 %v3105_v0 }
 0x249   :  { %2839 = vmatpush3.bf16.msra.mxu0 %v3062_v7 }
 0x24a   :  { %2840 = vmatprep.subr.bf16.mxu0 %v3105_v0 }
 0x24b   :  { %2861 = vmatpush3.bf16.msra.mxu1 %v3063_v8 }
 0x24c   :  { %2862 = vmatprep.subr.bf16.mxu1 %v3105_v0 }
 0x24d   :  { %2841 = vmatpush3.bf16.msra.mxu0 %v3064_v29 }
 0x24e   :  { %2842 = vmatprep.subr.bf16.mxu0 %v3105_v0 }
 0x24f   :  { %2863 = vmatpush3.bf16.msra.mxu1 %v3065_v30 }
 0x250   :  { %2864 = vmatprep.subr.bf16.mxu1 %v3105_v0 }
 0x251   :  { %2843 = vmatpush3.bf16.msra.mxu0 %v3066_v16 }
 0x252   :  { %2844 = vmatprep.subr.bf16.mxu0 %v3105_v0 }
 0x253   :  { %2865 = vmatpush3.bf16.msra.mxu1 %v3067_v62 }
 0x254   :  { %2866 = vmatprep.subr.bf16.mxu1 %v3105_v0 }
 0x255   :  { %2845 = vmatpush3.bf16.msra.mxu0 %v3068_v1 }
 0x256   :  { %2846 = vmatprep.subr.bf16.mxu0 %v3105_v0 }
 0x257   :  { %2867 = vmatpush3.bf16.msra.mxu1 %v3069_v40 }
 0x258   :  { %2868 = vmatprep.subr.bf16.mxu1 %v3105_v0 }
 0x259   :  { %2847 = vmatpush3.bf16.msra.mxu0 %v3070_v63 }
 0x25a   :  { %2848 = vmatprep.subr.bf16.mxu0 %v3105_v0 }
 0x25b   :  { %2869 = vmatpush3.bf16.msra.mxu1 %v3071_v2 }
 0x25c   :  { %2870 = vmatprep.subr.bf16.mxu1 %v3105_v0 }
 0x25d   :  { %2849 = vmatpush3.bf16.msra.mxu0 %v3072_v11 }
 0x25e   :  { %2850 = vmatprep.subr.bf16.mxu0 %v3105_v0 }
 0x25f   :  { %2871 = vmatpush3.bf16.msra.mxu1 %v3073_v45 }
 0x261   :  { %2851 = vmatpush3.bf16.msra.mxu0 %v3074_v46 }
 0x262   :  { %2873 = vmatmul.mubr.bf16.vlgmr.msra.gmra.mxu1 %v1848_v56  ;;  %2876 = vmatprep.subr.bf16.mxu0 %v3105_v0 }
 0x264   :  { %2853 = vmatmul.mubr.bf16.vlgmr.msra.gmra.mxu0 %v1740_v28 }
 0x265   :  { %2892 = vmatprep.mubr.msk.bf16.mxu0 %vm3106_vm0, %v3105_v0  ;;  %2877 = vmatpush3.bf16.msra.mxu0 %v3075_v51 }
 0x266   :  { %2878 = vmatprep.subr.bf16.mxu0 %v3105_v0 }
 0x269   :  { %2879 = vmatpush3.bf16.msra.mxu0 %v3076_v54 }
 0x26a   :  { %2880 = vmatprep.subr.bf16.mxu0 %v3105_v0 }
 0x26d   :  { %2881 = vmatpush3.bf16.msra.mxu0 %v3077_v17 }
 0x26e   :  { %2882 = vmatprep.subr.bf16.mxu0 %v3105_v0 }
 0x271   :  { %2883 = vmatpush3.bf16.msra.mxu0 %v3078_v20 }
 0x272   :  { %2884 = vmatprep.subr.bf16.mxu0 %v3105_v0 }
 0x275   :  { %2885 = vmatpush3.bf16.msra.mxu0 %v3079_v21 }
 0x276   :  { %2886 = vmatprep.subr.bf16.mxu0 %v3105_v0 }
 0x279   :  { %2887 = vmatpush3.bf16.msra.mxu0 %v3080_v4 }
 0x27a   :  { %2888 = vmatprep.subr.bf16.mxu0 %v3105_v0 }
 0x27d   :  { %2889 = vmatpush3.bf16.msra.mxu0 %v3081_v14 }
 0x27e   :  { %2890 = vmatprep.subr.bf16.mxu0 %v3105_v0  ;;  %v2365_v0 = vld [vmem:[%s3942_s6] ss:$0 sm:$0xff]  ;;  %s3083_s6 = scalar_lea.vmem %s2068_s18, 32 }
 0x27f   :  { %p3084_p0 = scmp.ne.s32.totalorder %s2068_s18, %s3083_s6  ;;  %p3089_p2 = scmp.lt.s32.totalorder %s3083_s6, %s3083_s6 }
 0x281   :  { %2891 = vmatpush3.bf16.msra.mxu0 %v3082_v5  ;;  %p3090_p3 = por %p3089_p2, %p3088_p1 }
 0x283   :  { %p3091_p4 = pnand %p3090_p3, %p3084_p0 }
 0x302   :  { %v1717_v15 = vpop.f32.mrf.mxu1 }
 0x304   :  { %v1629_v23 = vpop.f32.mrf.mxu0  ;;  %v2834_v24 = vpop.f32.mrf.mxu1 }
 0x305   :  { %v1718_v53 = vadd.f32 %v1717_v15, %v1629_v23 }
 0x306   :  { %v2814_v52 = vpop.f32.mrf.mxu0  ;;  %v1720_v55 = vpop.f32.mrf.mxu1 }
 0x308   :  { %v1632_v60 = vpop.f32.mrf.mxu0  ;;  %v2835_v61 = vpop.f32.mrf.mxu1 }
 0x30a   :  { %v2815_v25 = vpop.f32.mrf.mxu0 }
 0x322   :  { %v1932_v26 = vpop.f32.mrf.mxu1 }
 0x324   :  { %v1824_v59 = vpop.f32.mrf.mxu0  ;;  %v2874_v3 = vpop.f32.mrf.mxu1 }
 0x325   :  { %v1830_v44 = vadd.f32 %v1824_v59, %v1718_v53 }
 0x326   :  { %v2854_v43 = vpop.f32.mrf.mxu0  ;;  %v1935_v48 = vpop.f32.mrf.mxu1 }
 0x327   :  { %v1938_v18 = vadd.f32 %v1932_v26, %v1830_v44 }
 0x328   :  { %v1827_v19 = vpop.f32.mrf.mxu0  ;;  %v2875_v39 = vpop.f32.mrf.mxu1 }
 0x329   :  { %v1946_v49 = vadd.f32 %v2365_v0, %v1938_v18 }
 0x32a   :  { %v2855_v50 = vpop.f32.mrf.mxu0 }
 0x32b   :  { %v1947_v9 = vmax.f32 %v1946_v49, 0.0 }
 0x32d   :  { %v1948_v12 = vpack.c.bf16 %v1947_v9, %v1947_v9 }
 0x32f   :  { %2893 = vmatmul.mubr.bf16.vlgmr.msra.gmra.mxu0 %v1948_v12 }
 0x3ef   :  { %v2054_v13 = vpop.f32.mrf.mxu0 }
 0x3f0   :  { %v2055_v41 = vadd.f32 %v2366_v10, %v2054_v13 }
 0x3f1   :  { %v2894_v58 = vpop.f32.mrf.mxu0 }
 0x3f2   :  { %2060 = vst [vmem:[#allocation2] sm:$0x3] %v2055_v41 }
 0x3f3   :  { %v2057_v38 = vpop.f32.mrf.mxu0 }
 0x3f4   :  { %3094 = shalt.err (!%p3091_p4)
}
 0x3f5   :  { %2070 = dma.vmem_to_hbm [thread:$0]  %s2068_s18, 32, %s3945_s9, [#allocation3]   ;;  %v2895_v31 = vpop.f32.mrf.mxu0 }
 0x3f6   :  { %3103 = dma.done.wait [#allocation3], 32  }
 0x3f7   :  { %3104 = vsyncadd [#allocation3], 4294967264 }
 0x3f8   :  { %2074 = vsyncpa [#allocation3], 1 }

</bundles_post_ra>
